<compile_context>
chip_gen: v7x
topology: tpu7x:2x2x1
jax: 0.10.0
libtpu: 0.0.40
codegen_flags: <defaults>
</compile_context>

<pallas_src>
import functools

import jax
import jax.numpy as jnp
from jax.experimental import pallas as pl
from jax.experimental.pallas import tpu as pltpu

EPS = 1e-5                          # nn.BatchNorm2d default eps
_VMEM_LIMIT = 48 * 1024 * 1024      # < v7x's 64 MiB physical; fine on v5e/v6e


# ----------------------------- Pallas kernel bodies -------------------------

def _conv1_kernel(p_ref, w1_ref, *rest, stride, Ho, Wo, Cin, Cmid, proj):
    """3x3 stride-s conv (9 in-kernel taps) + fused 1x1 stride-s projection
    shortcut + per-image BN partial statistics.  One image per grid step."""
    if proj:
        ws_ref, y1_ref, st1_ref, ysc_ref, sts_ref = rest
    else:
        y1_ref, st1_ref = rest
    s = stride

    acc = jnp.zeros((Ho * Wo, Cmid), jnp.float32)
    for kh in range(3):
        for kw in range(3):
            g = (kh % s) * s + (kw % s)          # stride phase -> channel group of P
            qh, qw = kh // s, kw // s            # unit-stride offsets inside the phase
            tap = p_ref[0, qh:qh + Ho, qw:qw + Wo, g * Cin:(g + 1) * Cin]
            acc += jnp.dot(tap.reshape(Ho * Wo, Cin), w1_ref[kh * 3 + kw],
                           preferred_element_type=jnp.float32)
    y1_ref[0] = acc
    st1_ref[0, 0:1, :] = jnp.sum(acc, axis=0, keepdims=True)
    st1_ref[0, 1:2, :] = jnp.sum(acc * acc, axis=0, keepdims=True)

    if proj:
        # 1x1 stride-s shortcut conv reads the same resident input plane.
        g0 = (1 % s) * s + (1 % s)
        q0 = 1 // s
        tap = p_ref[0, q0:q0 + Ho, q0:q0 + Wo, g0 * Cin:(g0 + 1) * Cin]
        accs = jnp.dot(tap.reshape(Ho * Wo, Cin), ws_ref[...],
                       preferred_element_type=jnp.float32)
        ysc_ref[0] = accs
        sts_ref[0, 0:1, :] = jnp.sum(accs, axis=0, keepdims=True)
        sts_ref[0, 1:2, :] = jnp.sum(accs * accs, axis=0, keepdims=True)


def _conv2_kernel(y1_ref, s1_ref, b1_ref, w2_ref, y2_ref, st2_ref, a_sc,
                  *, Ho, Wo, Cmid):
    """Fused bn1-affine + ReLU + zero padding on the input (built in a VMEM
    scratch), then 3x3 stride-1 conv via 9 in-kernel taps + BN partials."""
    a_sc[...] = jnp.zeros(a_sc.shape, a_sc.dtype)                 # conv padding halo
    a = jnp.maximum(y1_ref[0] * s1_ref[...] + b1_ref[...], 0.0)   # (Ho, Wo, C)
    a_sc[1:1 + Ho, 1:1 + Wo, :] = a.astype(a_sc.dtype)            # bf16 for the MXU

    acc = jnp.zeros((Ho * Wo, Cmid), jnp.float32)
    for kh in range(3):
        for kw in range(3):
            tap = a_sc[kh:kh + Ho, kw:kw + Wo, :]
            acc += jnp.dot(tap.reshape(Ho * Wo, Cmid), w2_ref[kh * 3 + kw],
                           preferred_element_type=jnp.float32)
    y2_ref[0] = acc
    st2_ref[0, 0:1, :] = jnp.sum(acc, axis=0, keepdims=True)
    st2_ref[0, 1:2, :] = jnp.sum(acc * acc, axis=0, keepdims=True)


def _bn_add_relu_kernel(y2_ref, s2_ref, b2_ref, r_ref, sr_ref, br_ref, o_ref):
    # bn2(conv2) + bn_sc(shortcut) residual add + final ReLU (fused epilogue)
    o_ref[...] = jnp.maximum(
        y2_ref[...] * s2_ref[...] + b2_ref[...]
        + r_ref[...] * sr_ref[...] + br_ref[...],
        0.0,
    )


# ----------------------------- pallas_call wrappers --------------------------

def _conv1_call(P, w1, ws, N, Ho, Wo, Cin, Cmid, stride):
    proj = ws is not None
    Hq, Wq, Cg = P.shape[1], P.shape[2], P.shape[3]
    kernel = functools.partial(_conv1_kernel, stride=stride, Ho=Ho, Wo=Wo,
                               Cin=Cin, Cmid=Cmid, proj=proj)

    in_specs = [
        pl.BlockSpec((1, Hq, Wq, Cg), lambda n: (n, 0, 0, 0)),
        pl.BlockSpec((9, Cin, Cmid), lambda n: (0, 0, 0)),
    ]
    inputs = [P, w1]
    out_shape = [
        jax.ShapeDtypeStruct((N, Ho * Wo, Cmid), jnp.float32),
        jax.ShapeDtypeStruct((N, 2, Cmid), jnp.float32),
    ]
    out_specs = [
        pl.BlockSpec((1, Ho * Wo, Cmid), lambda n: (n, 0, 0)),
        pl.BlockSpec((1, 2, Cmid), lambda n: (n, 0, 0)),
    ]
    if proj:
        in_specs.append(pl.BlockSpec((Cin, Cmid), lambda n: (0, 0)))
        inputs.append(ws)
        out_shape += [
            jax.ShapeDtypeStruct((N, Ho * Wo, Cmid), jnp.float32),
            jax.ShapeDtypeStruct((N, 2, Cmid), jnp.float32),
        ]
        out_specs += [
            pl.BlockSpec((1, Ho * Wo, Cmid), lambda n: (n, 0, 0)),
            pl.BlockSpec((1, 2, Cmid), lambda n: (n, 0, 0)),
        ]

    return pl.pallas_call(
        kernel,
        grid=(N,),
        in_specs=in_specs,
        out_specs=tuple(out_specs),
        out_shape=tuple(out_shape),
        compiler_params=pltpu.CompilerParams(
            dimension_semantics=("parallel",),
            vmem_limit_bytes=_VMEM_LIMIT),
    )(*inputs)


def _conv2_call(y1_nhwc, s1, b1, w2, N, Ho, Wo, Cmid):
    kernel = functools.partial(_conv2_kernel, Ho=Ho, Wo=Wo, Cmid=Cmid)
    return pl.pallas_call(
        kernel,
        grid=(N,),
        in_specs=[
            pl.BlockSpec((1, Ho, Wo, Cmid), lambda n: (n, 0, 0, 0)),
            pl.BlockSpec((1, Cmid), lambda n: (0, 0)),
            pl.BlockSpec((1, Cmid), lambda n: (0, 0)),
            pl.BlockSpec((9, Cmid, Cmid), lambda n: (0, 0, 0)),
        ],
        out_specs=(
            pl.BlockSpec((1, Ho * Wo, Cmid), lambda n: (n, 0, 0)),
            pl.BlockSpec((1, 2, Cmid), lambda n: (n, 0, 0)),
        ),
        out_shape=(
            jax.ShapeDtypeStruct((N, Ho * Wo, Cmid), jnp.float32),
            jax.ShapeDtypeStruct((N, 2, Cmid), jnp.float32),
        ),
        scratch_shapes=[pltpu.VMEM((Ho + 2, Wo + 2, Cmid), jnp.bfloat16)],
        compiler_params=pltpu.CompilerParams(
            dimension_semantics=("parallel",),
            vmem_limit_bytes=_VMEM_LIMIT),
    )(y1_nhwc, s1, b1, w2)


def _bn_add_relu_call(y2, resid, s2, b2, sr, br):
    M, C = y2.shape
    bm = 512 if M > 512 else M
    row = pl.BlockSpec((bm, C), lambda i: (i, 0))
    vec = pl.BlockSpec((1, C), lambda i: (0, 0))
    return pl.pallas_call(
        _bn_add_relu_kernel,
        grid=(pl.cdiv(M, bm),),
        in_specs=[row, vec, vec, row, vec, vec],
        out_specs=row,
        out_shape=jax.ShapeDtypeStruct((M, C), jnp.float32),
        compiler_params=pltpu.CompilerParams(
            dimension_semantics=("parallel",),
            vmem_limit_bytes=_VMEM_LIMIT),
    )(y2, s2, b2, resid, sr, br)


# ----------------------------- JAX glue --------------------------------------

def _build_phase_split(x_nhwc, stride):
    """Zero-pad by 1 (the conv padding) and de-interleave the spatial stride
    phases so every 3x3 tap at this stride becomes a unit-stride static slice
    of one channel group -- no im2col, no strided loads inside the kernel."""
    N, H, W, C = x_nhwc.shape
    s = stride
    Ho = (H - 1) // s + 1
    Wo = (W - 1) // s + 1
    Hq = -(-(H + 2) // s)
    Wq = -(-(W + 2) // s)
    xp = jnp.pad(x_nhwc, ((0, 0), (1, Hq * s - H - 1), (1, Wq * s - W - 1), (0, 0)))
    if s == 1:
        return xp, Ho, Wo
    p = xp.reshape(N, Hq, s, Wq, s, C)
    p = p.transpose(0, 1, 3, 2, 4, 5).reshape(N, Hq, Wq, s * s * C)
    return p, Ho, Wo


def _bn_fold(stats, count, gamma, beta):
    # stats: (N, 2, C) per-image partial [sum, sum-of-squares]
    total = jnp.sum(stats, axis=0)                              # (2, C)
    mean = total[0] / count
    var = jnp.maximum(total[1] / count - mean * mean, 0.0)      # clamp (cancellation)
    scale = gamma / jnp.sqrt(var + EPS)
    bias = beta - mean * scale
    return (scale.reshape(1, -1).astype(jnp.float32),
            bias.reshape(1, -1).astype(jnp.float32))


def init_params(key, in_channels, out_channels, stride):
    ks = jax.random.split(key, 3)
    p = {
        # conv weights per tap: (kh*3+kw, Cin, Cout).  Conv biases omitted: a
        # per-channel bias before a training-mode BatchNorm cancels exactly.
        "w1": jax.random.normal(ks[0], (9, in_channels, out_channels), jnp.float32) * 0.1,
        "w2": jax.random.normal(ks[1], (9, out_channels, out_channels), jnp.float32) * 0.1,
        "g1": jnp.ones((out_channels,), jnp.float32),
        "be1": jnp.zeros((out_channels,), jnp.float32),
        "g2": jnp.ones((out_channels,), jnp.float32),
        "be2": jnp.zeros((out_channels,), jnp.float32),
    }
    if stride != 1 or in_channels != out_channels:
        p["ws"] = jax.random.normal(ks[2], (in_channels, out_channels), jnp.float32) * 0.1
        p["gs"] = jnp.ones((out_channels,), jnp.float32)
        p["bes"] = jnp.zeros((out_channels,), jnp.float32)
    return p


def basic_block_forward(x_nchw, p, stride):
    N, Cin, H, W = x_nchw.shape
    Cmid = p["w1"].shape[2]
    proj = "ws" in p

    x = jnp.transpose(x_nchw, (0, 2, 3, 1)).astype(jnp.float32)   # NCHW -> NHWC
    P, Ho, Wo = _build_phase_split(x, stride)
    M = N * Ho * Wo

    # conv1 (3x3, stride) fused with the projection shortcut (1x1, stride)
    w1 = p["w1"].astype(jnp.bfloat16)
    ws = p["ws"].astype(jnp.bfloat16) if proj else None
    outs = _conv1_call(P.astype(jnp.bfloat16), w1, ws, N, Ho, Wo, Cin, Cmid, stride)
    if proj:
        y1, st1, ysc, sts = outs
    else:
        y1, st1 = outs

    # bn1 (batch stats) folded to scale/bias; its affine+ReLU is fused into conv2
    s1, b1 = _bn_fold(st1, M, p["g1"], p["be1"])
    y2, st2 = _conv2_call(y1.reshape(N, Ho, Wo, Cmid), s1, b1,
                          p["w2"].astype(jnp.bfloat16), N, Ho, Wo, Cmid)
    s2, b2 = _bn_fold(st2, M, p["g2"], p["be2"])

    if proj:
        ssc, bsc = _bn_fold(sts, M, p["gs"], p["bes"])
        resid = ysc.reshape(M, Cmid)
    else:
        resid = x.reshape(M, Cmid)                 # identity shortcut
        ssc = jnp.ones((1, Cmid), jnp.float32)
        bsc = jnp.zeros((1, Cmid), jnp.float32)

    out = _bn_add_relu_call(y2.reshape(M, Cmid), resid, s2, b2, ssc, bsc)
    return out.reshape(N, Ho, Wo, Cmid).transpose(0, 3, 1, 2)     # NHWC -> NCHW


if __name__ == "__main__":
    key = jax.random.PRNGKey(0)
    in_channels, out_channels, stride = 4, 8, 2
    N, H, W = 2, 16, 16

    kx, kp = jax.random.split(key)
    x = jax.random.normal(kx, (N, in_channels, H, W), jnp.float32)
    params = init_params(kp, in_channels, out_channels, stride)

    fwd = jax.jit(lambda xx: basic_block_forward(xx, params, stride))
    out = fwd(x)
    jax.block_until_ready(out)
    Ho = (H - 1) // stride + 1
    Wo = (W - 1) // stride + 1
    assert out.shape == (N, out_channels, Ho, Wo), out.shape
    print("KERNEL_OK")
</pallas_src>

<mosaic_0001>
module attributes {stable_mosaic.version = 11 : i64} {
  func.func @_conv1_kernel(%arg0: i32, %arg1: memref<1x9x9x16xbf16, #tpu.memory_space<vmem>>, %arg2: memref<9x4x8xbf16, #tpu.memory_space<vmem>>, %arg3: memref<4x8xbf16, #tpu.memory_space<vmem>>, %arg4: memref<1x64x8xf32, #tpu.memory_space<vmem>>, %arg5: memref<1x2x8xf32, #tpu.memory_space<vmem>>, %arg6: memref<1x64x8xf32, #tpu.memory_space<vmem>>, %arg7: memref<1x2x8xf32, #tpu.memory_space<vmem>>) attributes {dimension_semantics = [#tpu.dimension_semantics<parallel>], iteration_bounds = array<i64: 2>, scalar_prefetch = 0 : i64, scratch_operands = 0 : i64, tpu.core_type = #tpu.core_type<tc>, window_params = [{transform_indices = @transform_0, window_bounds = array<i64: 1, 9, 9, 16>}, {pipeline_mode = #tpu.pipeline_mode<synchronous>, transform_indices = @transform_1, window_bounds = array<i64: 9, 4, 8>}, {pipeline_mode = #tpu.pipeline_mode<synchronous>, transform_indices = @transform_2, window_bounds = array<i64: 4, 8>}, {transform_indices = @transform_3, window_bounds = array<i64: 1, 64, 8>}, {transform_indices = @transform_4, window_bounds = array<i64: 1, 2, 8>}, {transform_indices = @transform_5, window_bounds = array<i64: 1, 64, 8>}, {transform_indices = @transform_6, window_bounds = array<i64: 1, 2, 8>}]} {
    %cst = arith.constant 0.000000e+00 : f32
    %0 = vector.broadcast %cst : f32 to vector<64x8xf32>
    %c0 = arith.constant 0 : index
    %c0_0 = arith.constant 0 : index
    %c0_1 = arith.constant 0 : index
    %c0_2 = arith.constant 0 : index
    %1 = vector.load %arg1[%c0, %c0_0, %c0_1, %c0_2] : memref<1x9x9x16xbf16, #tpu.memory_space<vmem>>, vector<1x8x8x4xbf16>
    %2 = vector.shape_cast %1 : vector<1x8x8x4xbf16> to vector<8x8x4xbf16>
    %3 = vector.shape_cast %2 : vector<8x8x4xbf16> to vector<64x4xbf16>
    %c0_3 = arith.constant 0 : index
    %c0_4 = arith.constant 0 : index
    %c0_5 = arith.constant 0 : index
    %4 = vector.load %arg2[%c0_3, %c0_4, %c0_5] : memref<9x4x8xbf16, #tpu.memory_space<vmem>>, vector<1x4x8xbf16>
    %5 = vector.shape_cast %4 : vector<1x4x8xbf16> to vector<4x8xbf16>
    %cst_6 = arith.constant dense<0.000000e+00> : vector<64x8xf32>
    %6 = tpu.matmul %3, %5, %cst_6 {dimension_numbers = #tpu.dot_dimension_numbers<[1], [0], [0], [1], [0, 0, 1, 1], [], []>} : vector<64x4xbf16>, vector<4x8xbf16>, vector<64x8xf32> -> vector<64x8xf32>
    %7 = arith.addf %0, %6 : vector<64x8xf32>
    %c0_7 = arith.constant 0 : index
    %c0_8 = arith.constant 0 : index
    %c0_9 = arith.constant 0 : index
    %c4 = arith.constant 4 : index
    %8 = vector.load %arg1[%c0_7, %c0_8, %c0_9, %c4] : memref<1x9x9x16xbf16, #tpu.memory_space<vmem>>, vector<1x8x8x4xbf16>
    %9 = vector.shape_cast %8 : vector<1x8x8x4xbf16> to vector<8x8x4xbf16>
    %10 = vector.shape_cast %9 : vector<8x8x4xbf16> to vector<64x4xbf16>
    %c1 = arith.constant 1 : index
    %c0_10 = arith.constant 0 : index
    %c0_11 = arith.constant 0 : index
    %11 = vector.load %arg2[%c1, %c0_10, %c0_11] : memref<9x4x8xbf16, #tpu.memory_space<vmem>>, vector<1x4x8xbf16>
    %12 = vector.shape_cast %11 : vector<1x4x8xbf16> to vector<4x8xbf16>
    %cst_12 = arith.constant dense<0.000000e+00> : vector<64x8xf32>
    %13 = tpu.matmul %10, %12, %cst_12 {dimension_numbers = #tpu.dot_dimension_numbers<[1], [0], [0], [1], [0, 0, 1, 1], [], []>} : vector<64x4xbf16>, vector<4x8xbf16>, vector<64x8xf32> -> vector<64x8xf32>
    %14 = arith.addf %7, %13 : vector<64x8xf32>
    %c0_13 = arith.constant 0 : index
    %c0_14 = arith.constant 0 : index
    %c1_15 = arith.constant 1 : index
    %c0_16 = arith.constant 0 : index
    %15 = vector.load %arg1[%c0_13, %c0_14, %c1_15, %c0_16] : memref<1x9x9x16xbf16, #tpu.memory_space<vmem>>, vector<1x8x8x4xbf16>
    %16 = vector.shape_cast %15 : vector<1x8x8x4xbf16> to vector<8x8x4xbf16>
    %17 = vector.shape_cast %16 : vector<8x8x4xbf16> to vector<64x4xbf16>
    %c2 = arith.constant 2 : index
    %c0_17 = arith.constant 0 : index
    %c0_18 = arith.constant 0 : index
    %18 = vector.load %arg2[%c2, %c0_17, %c0_18] : memref<9x4x8xbf16, #tpu.memory_space<vmem>>, vector<1x4x8xbf16>
    %19 = vector.shape_cast %18 : vector<1x4x8xbf16> to vector<4x8xbf16>
    %cst_19 = arith.constant dense<0.000000e+00> : vector<64x8xf32>
    %20 = tpu.matmul %17, %19, %cst_19 {dimension_numbers = #tpu.dot_dimension_numbers<[1], [0], [0], [1], [0, 0, 1, 1], [], []>} : vector<64x4xbf16>, vector<4x8xbf16>, vector<64x8xf32> -> vector<64x8xf32>
    %21 = arith.addf %14, %20 : vector<64x8xf32>
    %c0_20 = arith.constant 0 : index
    %c0_21 = arith.constant 0 : index
    %c0_22 = arith.constant 0 : index
    %c8 = arith.constant 8 : index
    %22 = vector.load %arg1[%c0_20, %c0_21, %c0_22, %c8] : memref<1x9x9x16xbf16, #tpu.memory_space<vmem>>, vector<1x8x8x4xbf16>
    %23 = vector.shape_cast %22 : vector<1x8x8x4xbf16> to vector<8x8x4xbf16>
    %24 = vector.shape_cast %23 : vector<8x8x4xbf16> to vector<64x4xbf16>
    %c3 = arith.constant 3 : index
    %c0_23 = arith.constant 0 : index
    %c0_24 = arith.constant 0 : index
    %25 = vector.load %arg2[%c3, %c0_23, %c0_24] : memref<9x4x8xbf16, #tpu.memory_space<vmem>>, vector<1x4x8xbf16>
    %26 = vector.shape_cast %25 : vector<1x4x8xbf16> to vector<4x8xbf16>
    %cst_25 = arith.constant dense<0.000000e+00> : vector<64x8xf32>
    %27 = tpu.matmul %24, %26, %cst_25 {dimension_numbers = #tpu.dot_dimension_numbers<[1], [0], [0], [1], [0, 0, 1, 1], [], []>} : vector<64x4xbf16>, vector<4x8xbf16>, vector<64x8xf32> -> vector<64x8xf32>
    %28 = arith.addf %21, %27 : vector<64x8xf32>
    %c0_26 = arith.constant 0 : index
    %c0_27 = arith.constant 0 : index
    %c0_28 = arith.constant 0 : index
    %c12 = arith.constant 12 : index
    %29 = vector.load %arg1[%c0_26, %c0_27, %c0_28, %c12] : memref<1x9x9x16xbf16, #tpu.memory_space<vmem>>, vector<1x8x8x4xbf16>
    %30 = vector.shape_cast %29 : vector<1x8x8x4xbf16> to vector<8x8x4xbf16>
    %31 = vector.shape_cast %30 : vector<8x8x4xbf16> to vector<64x4xbf16>
    %c4_29 = arith.constant 4 : index
    %c0_30 = arith.constant 0 : index
    %c0_31 = arith.constant 0 : index
    %32 = vector.load %arg2[%c4_29, %c0_30, %c0_31] : memref<9x4x8xbf16, #tpu.memory_space<vmem>>, vector<1x4x8xbf16>
    %33 = vector.shape_cast %32 : vector<1x4x8xbf16> to vector<4x8xbf16>
    %cst_32 = arith.constant dense<0.000000e+00> : vector<64x8xf32>
    %34 = tpu.matmul %31, %33, %cst_32 {dimension_numbers = #tpu.dot_dimension_numbers<[1], [0], [0], [1], [0, 0, 1, 1], [], []>} : vector<64x4xbf16>, vector<4x8xbf16>, vector<64x8xf32> -> vector<64x8xf32>
    %35 = arith.addf %28, %34 : vector<64x8xf32>
    %c0_33 = arith.constant 0 : index
    %c0_34 = arith.constant 0 : index
    %c1_35 = arith.constant 1 : index
    %c8_36 = arith.constant 8 : index
    %36 = vector.load %arg1[%c0_33, %c0_34, %c1_35, %c8_36] : memref<1x9x9x16xbf16, #tpu.memory_space<vmem>>, vector<1x8x8x4xbf16>
    %37 = vector.shape_cast %36 : vector<1x8x8x4xbf16> to vector<8x8x4xbf16>
    %38 = vector.shape_cast %37 : vector<8x8x4xbf16> to vector<64x4xbf16>
    %c5 = arith.constant 5 : index
    %c0_37 = arith.constant 0 : index
    %c0_38 = arith.constant 0 : index
    %39 = vector.load %arg2[%c5, %c0_37, %c0_38] : memref<9x4x8xbf16, #tpu.memory_space<vmem>>, vector<1x4x8xbf16>
    %40 = vector.shape_cast %39 : vector<1x4x8xbf16> to vector<4x8xbf16>
    %cst_39 = arith.constant dense<0.000000e+00> : vector<64x8xf32>
    %41 = tpu.matmul %38, %40, %cst_39 {dimension_numbers = #tpu.dot_dimension_numbers<[1], [0], [0], [1], [0, 0, 1, 1], [], []>} : vector<64x4xbf16>, vector<4x8xbf16>, vector<64x8xf32> -> vector<64x8xf32>
    %42 = arith.addf %35, %41 : vector<64x8xf32>
    %c0_40 = arith.constant 0 : index
    %c1_41 = arith.constant 1 : index
    %c0_42 = arith.constant 0 : index
    %c0_43 = arith.constant 0 : index
    %43 = vector.load %arg1[%c0_40, %c1_41, %c0_42, %c0_43] : memref<1x9x9x16xbf16, #tpu.memory_space<vmem>>, vector<1x8x8x4xbf16>
    %44 = vector.shape_cast %43 : vector<1x8x8x4xbf16> to vector<8x8x4xbf16>
    %45 = vector.shape_cast %44 : vector<8x8x4xbf16> to vector<64x4xbf16>
    %c6 = arith.constant 6 : index
    %c0_44 = arith.constant 0 : index
    %c0_45 = arith.constant 0 : index
    %46 = vector.load %arg2[%c6, %c0_44, %c0_45] : memref<9x4x8xbf16, #tpu.memory_space<vmem>>, vector<1x4x8xbf16>
    %47 = vector.shape_cast %46 : vector<1x4x8xbf16> to vector<4x8xbf16>
    %cst_46 = arith.constant dense<0.000000e+00> : vector<64x8xf32>
    %48 = tpu.matmul %45, %47, %cst_46 {dimension_numbers = #tpu.dot_dimension_numbers<[1], [0], [0], [1], [0, 0, 1, 1], [], []>} : vector<64x4xbf16>, vector<4x8xbf16>, vector<64x8xf32> -> vector<64x8xf32>
    %49 = arith.addf %42, %48 : vector<64x8xf32>
    %c0_47 = arith.constant 0 : index
    %c1_48 = arith.constant 1 : index
    %c0_49 = arith.constant 0 : index
    %c4_50 = arith.constant 4 : index
    %50 = vector.load %arg1[%c0_47, %c1_48, %c0_49, %c4_50] : memref<1x9x9x16xbf16, #tpu.memory_space<vmem>>, vector<1x8x8x4xbf16>
    %51 = vector.shape_cast %50 : vector<1x8x8x4xbf16> to vector<8x8x4xbf16>
    %52 = vector.shape_cast %51 : vector<8x8x4xbf16> to vector<64x4xbf16>
    %c7 = arith.constant 7 : index
    %c0_51 = arith.constant 0 : index
    %c0_52 = arith.constant 0 : index
    %53 = vector.load %arg2[%c7, %c0_51, %c0_52] : memref<9x4x8xbf16, #tpu.memory_space<vmem>>, vector<1x4x8xbf16>
    %54 = vector.shape_cast %53 : vector<1x4x8xbf16> to vector<4x8xbf16>
    %cst_53 = arith.constant dense<0.000000e+00> : vector<64x8xf32>
    %55 = tpu.matmul %52, %54, %cst_53 {dimension_numbers = #tpu.dot_dimension_numbers<[1], [0], [0], [1], [0, 0, 1, 1], [], []>} : vector<64x4xbf16>, vector<4x8xbf16>, vector<64x8xf32> -> vector<64x8xf32>
    %56 = arith.addf %49, %55 : vector<64x8xf32>
    %c0_54 = arith.constant 0 : index
    %c1_55 = arith.constant 1 : index
    %c1_56 = arith.constant 1 : index
    %c0_57 = arith.constant 0 : index
    %57 = vector.load %arg1[%c0_54, %c1_55, %c1_56, %c0_57] : memref<1x9x9x16xbf16, #tpu.memory_space<vmem>>, vector<1x8x8x4xbf16>
    %58 = vector.shape_cast %57 : vector<1x8x8x4xbf16> to vector<8x8x4xbf16>
    %59 = vector.shape_cast %58 : vector<8x8x4xbf16> to vector<64x4xbf16>
    %c8_58 = arith.constant 8 : index
    %c0_59 = arith.constant 0 : index
    %c0_60 = arith.constant 0 : index
    %60 = vector.load %arg2[%c8_58, %c0_59, %c0_60] : memref<9x4x8xbf16, #tpu.memory_space<vmem>>, vector<1x4x8xbf16>
    %61 = vector.shape_cast %60 : vector<1x4x8xbf16> to vector<4x8xbf16>
    %cst_61 = arith.constant dense<0.000000e+00> : vector<64x8xf32>
    %62 = tpu.matmul %59, %61, %cst_61 {dimension_numbers = #tpu.dot_dimension_numbers<[1], [0], [0], [1], [0, 0, 1, 1], [], []>} : vector<64x4xbf16>, vector<4x8xbf16>, vector<64x8xf32> -> vector<64x8xf32>
    %63 = arith.addf %56, %62 : vector<64x8xf32>
    %c0_62 = arith.constant 0 : index
    %c0_63 = arith.constant 0 : index
    %c0_64 = arith.constant 0 : index
    %64 = vector.load %arg4[%c0_62, %c0_63, %c0_64] : memref<1x64x8xf32, #tpu.memory_space<vmem>>, vector<1x64x8xf32>
    %65 = vector.shape_cast %64 : vector<1x64x8xf32> to vector<64x8xf32>
    %66 = vector.shape_cast %63 : vector<64x8xf32> to vector<1x64x8xf32>
    tpu.vector_store %arg4[%c0_62, %c0_63, %c0_64], %66 {strides = array<i32>} : memref<1x64x8xf32, #tpu.memory_space<vmem>>, vector<1x64x8xf32>,
    %cst_65 = arith.constant dense<0.000000e+00> : vector<8xf32>
    %67 = vector.multi_reduction <add>, %63, %cst_65 [0] : vector<64x8xf32> to vector<8xf32>
    %68 = vector.shape_cast %67 : vector<8xf32> to vector<1x8xf32>
    %c0_66 = arith.constant 0 : index
    %c0_67 = arith.constant 0 : index
    %c0_68 = arith.constant 0 : index
    %69 = vector.load %arg5[%c0_66, %c0_67, %c0_68] : memref<1x2x8xf32, #tpu.memory_space<vmem>>, vector<1x1x8xf32>
    %70 = vector.shape_cast %69 : vector<1x1x8xf32> to vector<1x8xf32>
    %71 = vector.shape_cast %68 : vector<1x8xf32> to vector<1x1x8xf32>
    tpu.vector_store %arg5[%c0_66, %c0_67, %c0_68], %71 {strides = array<i32>} : memref<1x2x8xf32, #tpu.memory_space<vmem>>, vector<1x1x8xf32>,
    %72 = arith.mulf %63, %63 : vector<64x8xf32>
    %cst_69 = arith.constant dense<0.000000e+00> : vector<8xf32>
    %73 = vector.multi_reduction <add>, %72, %cst_69 [0] : vector<64x8xf32> to vector<8xf32>
    %74 = vector.shape_cast %73 : vector<8xf32> to vector<1x8xf32>
    %c0_70 = arith.constant 0 : index
    %c1_71 = arith.constant 1 : index
    %c0_72 = arith.constant 0 : index
    %75 = vector.load %arg5[%c0_70, %c1_71, %c0_72] : memref<1x2x8xf32, #tpu.memory_space<vmem>>, vector<1x1x8xf32>
    %76 = vector.shape_cast %75 : vector<1x1x8xf32> to vector<1x8xf32>
    %77 = vector.shape_cast %74 : vector<1x8xf32> to vector<1x1x8xf32>
    tpu.vector_store %arg5[%c0_70, %c1_71, %c0_72], %77 {strides = array<i32>} : memref<1x2x8xf32, #tpu.memory_space<vmem>>, vector<1x1x8xf32>,
    %c0_73 = arith.constant 0 : index
    %c0_74 = arith.constant 0 : index
    %c0_75 = arith.constant 0 : index
    %c12_76 = arith.constant 12 : index
    %78 = vector.load %arg1[%c0_73, %c0_74, %c0_75, %c12_76] : memref<1x9x9x16xbf16, #tpu.memory_space<vmem>>, vector<1x8x8x4xbf16>
    %79 = vector.shape_cast %78 : vector<1x8x8x4xbf16> to vector<8x8x4xbf16>
    %80 = vector.shape_cast %79 : vector<8x8x4xbf16> to vector<64x4xbf16>
    %c0_77 = arith.constant 0 : index
    %c0_78 = arith.constant 0 : index
    %81 = vector.load %arg3[%c0_77, %c0_78] : memref<4x8xbf16, #tpu.memory_space<vmem>>, vector<4x8xbf16>
    %cst_79 = arith.constant dense<0.000000e+00> : vector<64x8xf32>
    %82 = tpu.matmul %80, %81, %cst_79 {dimension_numbers = #tpu.dot_dimension_numbers<[1], [0], [0], [1], [0, 0, 1, 1], [], []>} : vector<64x4xbf16>, vector<4x8xbf16>, vector<64x8xf32> -> vector<64x8xf32>
    %c0_80 = arith.constant 0 : index
    %c0_81 = arith.constant 0 : index
    %c0_82 = arith.constant 0 : index
    %83 = vector.load %arg6[%c0_80, %c0_81, %c0_82] : memref<1x64x8xf32, #tpu.memory_space<vmem>>, vector<1x64x8xf32>
    %84 = vector.shape_cast %83 : vector<1x64x8xf32> to vector<64x8xf32>
    %85 = vector.shape_cast %82 : vector<64x8xf32> to vector<1x64x8xf32>
    tpu.vector_store %arg6[%c0_80, %c0_81, %c0_82], %85 {strides = array<i32>} : memref<1x64x8xf32, #tpu.memory_space<vmem>>, vector<1x64x8xf32>,
    %cst_83 = arith.constant dense<0.000000e+00> : vector<8xf32>
    %86 = vector.multi_reduction <add>, %82, %cst_83 [0] : vector<64x8xf32> to vector<8xf32>
    %87 = vector.shape_cast %86 : vector<8xf32> to vector<1x8xf32>
    %c0_84 = arith.constant 0 : index
    %c0_85 = arith.constant 0 : index
    %c0_86 = arith.constant 0 : index
    %88 = vector.load %arg7[%c0_84, %c0_85, %c0_86] : memref<1x2x8xf32, #tpu.memory_space<vmem>>, vector<1x1x8xf32>
    %89 = vector.shape_cast %88 : vector<1x1x8xf32> to vector<1x8xf32>
    %90 = vector.shape_cast %87 : vector<1x8xf32> to vector<1x1x8xf32>
    tpu.vector_store %arg7[%c0_84, %c0_85, %c0_86], %90 {strides = array<i32>} : memref<1x2x8xf32, #tpu.memory_space<vmem>>, vector<1x1x8xf32>,
    %91 = arith.mulf %82, %82 : vector<64x8xf32>
    %cst_87 = arith.constant dense<0.000000e+00> : vector<8xf32>
    %92 = vector.multi_reduction <add>, %91, %cst_87 [0] : vector<64x8xf32> to vector<8xf32>
    %93 = vector.shape_cast %92 : vector<8xf32> to vector<1x8xf32>
    %c0_88 = arith.constant 0 : index
    %c1_89 = arith.constant 1 : index
    %c0_90 = arith.constant 0 : index
    %94 = vector.load %arg7[%c0_88, %c1_89, %c0_90] : memref<1x2x8xf32, #tpu.memory_space<vmem>>, vector<1x1x8xf32>
    %95 = vector.shape_cast %94 : vector<1x1x8xf32> to vector<1x8xf32>
    %96 = vector.shape_cast %93 : vector<1x8xf32> to vector<1x1x8xf32>
    tpu.vector_store %arg7[%c0_88, %c1_89, %c0_90], %96 {strides = array<i32>} : memref<1x2x8xf32, #tpu.memory_space<vmem>>, vector<1x1x8xf32>,
    return
  }
  func.func @transform_0(%arg0: i32) -> (i32, i32, i32, i32) {
    %c0_i32 = arith.constant 0 : i32
    %c0_i32_0 = arith.constant 0 : i32
    %c0_i32_1 = arith.constant 0 : i32
    %c0_i32_2 = arith.constant 0 : i32
    return %arg0, %c0_i32, %c0_i32_0, %c0_i32_1 : i32, i32, i32, i32
  }
  func.func @transform_1(%arg0: i32) -> (i32, i32, i32) {
    %c0_i32 = arith.constant 0 : i32
    %c0_i32_0 = arith.constant 0 : i32
    %c0_i32_1 = arith.constant 0 : i32
    %c0_i32_2 = arith.constant 0 : i32
    return %c0_i32, %c0_i32_0, %c0_i32_1 : i32, i32, i32
  }
  func.func @transform_2(%arg0: i32) -> (i32, i32) {
    %c0_i32 = arith.constant 0 : i32
    %c0_i32_0 = arith.constant 0 : i32
    %c0_i32_1 = arith.constant 0 : i32
    return %c0_i32, %c0_i32_0 : i32, i32
  }
  func.func @transform_3(%arg0: i32) -> (i32, i32, i32) {
    %c0_i32 = arith.constant 0 : i32
    %c0_i32_0 = arith.constant 0 : i32
    %c0_i32_1 = arith.constant 0 : i32
    return %arg0, %c0_i32, %c0_i32_0 : i32, i32, i32
  }
  func.func @transform_4(%arg0: i32) -> (i32, i32, i32) {
    %c0_i32 = arith.constant 0 : i32
    %c0_i32_0 = arith.constant 0 : i32
    %c0_i32_1 = arith.constant 0 : i32
    return %arg0, %c0_i32, %c0_i32_0 : i32, i32, i32
  }
  func.func @transform_5(%arg0: i32) -> (i32, i32, i32) {
    %c0_i32 = arith.constant 0 : i32
    %c0_i32_0 = arith.constant 0 : i32
    %c0_i32_1 = arith.constant 0 : i32
    return %arg0, %c0_i32, %c0_i32_0 : i32, i32, i32
  }
  func.func @transform_6(%arg0: i32) -> (i32, i32, i32) {
    %c0_i32 = arith.constant 0 : i32
    %c0_i32_0 = arith.constant 0 : i32
    %c0_i32_1 = arith.constant 0 : i32
    return %arg0, %c0_i32, %c0_i32_0 : i32, i32, i32
  }
}

module attributes {stable_mosaic.version = 11 : i64} {
  func.func @_bn_add_relu_kernel(%arg0: i32, %arg1: memref<128x8xf32, #tpu.memory_space<vmem>>, %arg2: memref<1x8xf32, #tpu.memory_space<vmem>>, %arg3: memref<1x8xf32, #tpu.memory_space<vmem>>, %arg4: memref<128x8xf32, #tpu.memory_space<vmem>>, %arg5: memref<1x8xf32, #tpu.memory_space<vmem>>, %arg6: memref<1x8xf32, #tpu.memory_space<vmem>>, %arg7: memref<128x8xf32, #tpu.memory_space<vmem>>) attributes {dimension_semantics = [#tpu.dimension_semantics<parallel>], iteration_bounds = array<i64: 1>, scalar_prefetch = 0 : i64, scratch_operands = 0 : i64, tpu.core_type = #tpu.core_type<tc>, window_params = [{transform_indices = @transform_0, window_bounds = array<i64: 128, 8>}, {pipeline_mode = #tpu.pipeline_mode<synchronous>, transform_indices = @transform_1, window_bounds = array<i64: 1, 8>}, {pipeline_mode = #tpu.pipeline_mode<synchronous>, transform_indices = @transform_2, window_bounds = array<i64: 1, 8>}, {transform_indices = @transform_3, window_bounds = array<i64: 128, 8>}, {pipeline_mode = #tpu.pipeline_mode<synchronous>, transform_indices = @transform_4, window_bounds = array<i64: 1, 8>}, {pipeline_mode = #tpu.pipeline_mode<synchronous>, transform_indices = @transform_5, window_bounds = array<i64: 1, 8>}, {transform_indices = @transform_6, window_bounds = array<i64: 128, 8>}]} {
    %c0 = arith.constant 0 : index
    %c0_0 = arith.constant 0 : index
    %0 = vector.load %arg1[%c0, %c0_0] : memref<128x8xf32, #tpu.memory_space<vmem>>, vector<128x8xf32>
    %c0_1 = arith.constant 0 : index
    %c0_2 = arith.constant 0 : index
    %1 = vector.load %arg2[%c0_1, %c0_2] : memref<1x8xf32, #tpu.memory_space<vmem>>, vector<1x8xf32>
    %2 = vector.broadcast %1 : vector<1x8xf32> to vector<128x8xf32>
    %3 = arith.mulf %0, %2 : vector<128x8xf32>
    %c0_3 = arith.constant 0 : index
    %c0_4 = arith.constant 0 : index
    %4 = vector.load %arg3[%c0_3, %c0_4] : memref<1x8xf32, #tpu.memory_space<vmem>>, vector<1x8xf32>
    %5 = vector.broadcast %4 : vector<1x8xf32> to vector<128x8xf32>
    %6 = arith.addf %3, %5 : vector<128x8xf32>
    %c0_5 = arith.constant 0 : index
    %c0_6 = arith.constant 0 : index
    %7 = vector.load %arg4[%c0_5, %c0_6] : memref<128x8xf32, #tpu.memory_space<vmem>>, vector<128x8xf32>
    %c0_7 = arith.constant 0 : index
    %c0_8 = arith.constant 0 : index
    %8 = vector.load %arg5[%c0_7, %c0_8] : memref<1x8xf32, #tpu.memory_space<vmem>>, vector<1x8xf32>
    %9 = vector.broadcast %8 : vector<1x8xf32> to vector<128x8xf32>
    %10 = arith.mulf %7, %9 : vector<128x8xf32>
    %11 = arith.addf %6, %10 : vector<128x8xf32>
    %c0_9 = arith.constant 0 : index
    %c0_10 = arith.constant 0 : index
    %12 = vector.load %arg6[%c0_9, %c0_10] : memref<1x8xf32, #tpu.memory_space<vmem>>, vector<1x8xf32>
    %13 = vector.broadcast %12 : vector<1x8xf32> to vector<128x8xf32>
    %14 = arith.addf %11, %13 : vector<128x8xf32>
    %cst = arith.constant 0.000000e+00 : f32
    %15 = vector.broadcast %cst : f32 to vector<128x8xf32>
    %16 = arith.maximumf %14, %15 : vector<128x8xf32>
    %c0_11 = arith.constant 0 : index
    %c0_12 = arith.constant 0 : index
    %17 = vector.load %arg7[%c0_11, %c0_12] : memref<128x8xf32, #tpu.memory_space<vmem>>, vector<128x8xf32>
    tpu.vector_store %arg7[%c0_11, %c0_12], %16 {strides = array<i32>} : memref<128x8xf32, #tpu.memory_space<vmem>>, vector<128x8xf32>,
    return
  }
  func.func @transform_0(%arg0: i32) -> (i32, i32) {
    %c0_i32 = arith.constant 0 : i32
    %c0_i32_0 = arith.constant 0 : i32
    return %arg0, %c0_i32 : i32, i32
  }
  func.func @transform_1(%arg0: i32) -> (i32, i32) {
    %c0_i32 = arith.constant 0 : i32
    %c0_i32_0 = arith.constant 0 : i32
    %c0_i32_1 = arith.constant 0 : i32
    return %c0_i32, %c0_i32_0 : i32, i32
  }
  func.func @transform_2(%arg0: i32) -> (i32, i32) {
    %c0_i32 = arith.constant 0 : i32
    %c0_i32_0 = arith.constant 0 : i32
    %c0_i32_1 = arith.constant 0 : i32
    return %c0_i32, %c0_i32_0 : i32, i32
  }
  func.func @transform_3(%arg0: i32) -> (i32, i32) {
    %c0_i32 = arith.constant 0 : i32
    %c0_i32_0 = arith.constant 0 : i32
    return %arg0, %c0_i32 : i32, i32
  }
  func.func @transform_4(%arg0: i32) -> (i32, i32) {
    %c0_i32 = arith.constant 0 : i32
    %c0_i32_0 = arith.constant 0 : i32
    %c0_i32_1 = arith.constant 0 : i32
    return %c0_i32, %c0_i32_0 : i32, i32
  }
  func.func @transform_5(%arg0: i32) -> (i32, i32) {
    %c0_i32 = arith.constant 0 : i32
    %c0_i32_0 = arith.constant 0 : i32
    %c0_i32_1 = arith.constant 0 : i32
    return %c0_i32, %c0_i32_0 : i32, i32
  }
  func.func @transform_6(%arg0: i32) -> (i32, i32) {
    %c0_i32 = arith.constant 0 : i32
    %c0_i32_0 = arith.constant 0 : i32
    return %arg0, %c0_i32 : i32, i32
  }
}

module attributes {stable_mosaic.version = 11 : i64} {
  func.func @_conv2_kernel(%arg0: i32, %arg1: memref<1x8x8x8xf32, #tpu.memory_space<vmem>>, %arg2: memref<1x8xf32, #tpu.memory_space<vmem>>, %arg3: memref<1x8xf32, #tpu.memory_space<vmem>>, %arg4: memref<9x8x8xbf16, #tpu.memory_space<vmem>>, %arg5: memref<1x64x8xf32, #tpu.memory_space<vmem>>, %arg6: memref<1x2x8xf32, #tpu.memory_space<vmem>>, %arg7: memref<10x10x8xbf16, #tpu.memory_space<vmem>>) attributes {dimension_semantics = [#tpu.dimension_semantics<parallel>], iteration_bounds = array<i64: 2>, scalar_prefetch = 0 : i64, scratch_operands = 1 : i64, tpu.core_type = #tpu.core_type<tc>, window_params = [{transform_indices = @transform_0, window_bounds = array<i64: 1, 8, 8, 8>}, {pipeline_mode = #tpu.pipeline_mode<synchronous>, transform_indices = @transform_1, window_bounds = array<i64: 1, 8>}, {pipeline_mode = #tpu.pipeline_mode<synchronous>, transform_indices = @transform_2, window_bounds = array<i64: 1, 8>}, {pipeline_mode = #tpu.pipeline_mode<synchronous>, transform_indices = @transform_3, window_bounds = array<i64: 9, 8, 8>}, {transform_indices = @transform_4, window_bounds = array<i64: 1, 64, 8>}, {transform_indices = @transform_5, window_bounds = array<i64: 1, 2, 8>}]} {
    %cst = arith.constant 0.000000e+00 : bf16
    %0 = vector.broadcast %cst : bf16 to vector<10x10x8xbf16>
    %c0 = arith.constant 0 : index
    %c0_0 = arith.constant 0 : index
    %c0_1 = arith.constant 0 : index
    %1 = vector.load %arg7[%c0, %c0_0, %c0_1] : memref<10x10x8xbf16, #tpu.memory_space<vmem>>, vector<10x10x8xbf16>
    tpu.vector_store %arg7[%c0, %c0_0, %c0_1], %0 {strides = array<i32>} : memref<10x10x8xbf16, #tpu.memory_space<vmem>>, vector<10x10x8xbf16>,
    %c0_2 = arith.constant 0 : index
    %c0_3 = arith.constant 0 : index
    %c0_4 = arith.constant 0 : index
    %c0_5 = arith.constant 0 : index
    %2 = vector.load %arg1[%c0_2, %c0_3, %c0_4, %c0_5] : memref<1x8x8x8xf32, #tpu.memory_space<vmem>>, vector<1x8x8x8xf32>
    %3 = vector.shape_cast %2 : vector<1x8x8x8xf32> to vector<8x8x8xf32>
    %c0_6 = arith.constant 0 : index
    %c0_7 = arith.constant 0 : index
    %4 = vector.load %arg2[%c0_6, %c0_7] : memref<1x8xf32, #tpu.memory_space<vmem>>, vector<1x8xf32>
    %5 = vector.shape_cast %4 : vector<1x8xf32> to vector<1x1x8xf32>
    %6 = vector.broadcast %5 : vector<1x1x8xf32> to vector<8x8x8xf32>
    %7 = arith.mulf %3, %6 : vector<8x8x8xf32>
    %c0_8 = arith.constant 0 : index
    %c0_9 = arith.constant 0 : index
    %8 = vector.load %arg3[%c0_8, %c0_9] : memref<1x8xf32, #tpu.memory_space<vmem>>, vector<1x8xf32>
    %9 = vector.shape_cast %8 : vector<1x8xf32> to vector<1x1x8xf32>
    %10 = vector.broadcast %9 : vector<1x1x8xf32> to vector<8x8x8xf32>
    %11 = arith.addf %7, %10 : vector<8x8x8xf32>
    %cst_10 = arith.constant 0.000000e+00 : f32
    %12 = vector.broadcast %cst_10 : f32 to vector<8x8x8xf32>
    %13 = arith.maximumf %11, %12 : vector<8x8x8xf32>
    %14 = arith.truncf %13 : vector<8x8x8xf32> to vector<8x8x8xbf16>
    %c1 = arith.constant 1 : index
    %c1_11 = arith.constant 1 : index
    %c0_12 = arith.constant 0 : index
    %15 = vector.load %arg7[%c1, %c1_11, %c0_12] : memref<10x10x8xbf16, #tpu.memory_space<vmem>>, vector<8x8x8xbf16>
    tpu.vector_store %arg7[%c1, %c1_11, %c0_12], %14 {strides = array<i32>} : memref<10x10x8xbf16, #tpu.memory_space<vmem>>, vector<8x8x8xbf16>,
    %cst_13 = arith.constant 0.000000e+00 : f32
    %16 = vector.broadcast %cst_13 : f32 to vector<64x8xf32>
    %c0_14 = arith.constant 0 : index
    %c0_15 = arith.constant 0 : index
    %c0_16 = arith.constant 0 : index
    %17 = vector.load %arg7[%c0_14, %c0_15, %c0_16] : memref<10x10x8xbf16, #tpu.memory_space<vmem>>, vector<8x8x8xbf16>
    %18 = vector.shape_cast %17 : vector<8x8x8xbf16> to vector<64x8xbf16>
    %c0_17 = arith.constant 0 : index
    %c0_18 = arith.constant 0 : index
    %c0_19 = arith.constant 0 : index
    %19 = vector.load %arg4[%c0_17, %c0_18, %c0_19] : memref<9x8x8xbf16, #tpu.memory_space<vmem>>, vector<1x8x8xbf16>
    %20 = vector.shape_cast %19 : vector<1x8x8xbf16> to vector<8x8xbf16>
    %cst_20 = arith.constant dense<0.000000e+00> : vector<64x8xf32>
    %21 = tpu.matmul %18, %20, %cst_20 {dimension_numbers = #tpu.dot_dimension_numbers<[1], [0], [0], [1], [0, 0, 1, 1], [], []>} : vector<64x8xbf16>, vector<8x8xbf16>, vector<64x8xf32> -> vector<64x8xf32>
    %22 = arith.addf %16, %21 : vector<64x8xf32>
    %c0_21 = arith.constant 0 : index
    %c1_22 = arith.constant 1 : index
    %c0_23 = arith.constant 0 : index
    %23 = vector.load %arg7[%c0_21, %c1_22, %c0_23] : memref<10x10x8xbf16, #tpu.memory_space<vmem>>, vector<8x8x8xbf16>
    %24 = vector.shape_cast %23 : vector<8x8x8xbf16> to vector<64x8xbf16>
    %c1_24 = arith.constant 1 : index
    %c0_25 = arith.constant 0 : index
    %c0_26 = arith.constant 0 : index
    %25 = vector.load %arg4[%c1_24, %c0_25, %c0_26] : memref<9x8x8xbf16, #tpu.memory_space<vmem>>, vector<1x8x8xbf16>
    %26 = vector.shape_cast %25 : vector<1x8x8xbf16> to vector<8x8xbf16>
    %cst_27 = arith.constant dense<0.000000e+00> : vector<64x8xf32>
    %27 = tpu.matmul %24, %26, %cst_27 {dimension_numbers = #tpu.dot_dimension_numbers<[1], [0], [0], [1], [0, 0, 1, 1], [], []>} : vector<64x8xbf16>, vector<8x8xbf16>, vector<64x8xf32> -> vector<64x8xf32>
    %28 = arith.addf %22, %27 : vector<64x8xf32>
    %c0_28 = arith.constant 0 : index
    %c2 = arith.constant 2 : index
    %c0_29 = arith.constant 0 : index
    %29 = vector.load %arg7[%c0_28, %c2, %c0_29] : memref<10x10x8xbf16, #tpu.memory_space<vmem>>, vector<8x8x8xbf16>
    %30 = vector.shape_cast %29 : vector<8x8x8xbf16> to vector<64x8xbf16>
    %c2_30 = arith.constant 2 : index
    %c0_31 = arith.constant 0 : index
    %c0_32 = arith.constant 0 : index
    %31 = vector.load %arg4[%c2_30, %c0_31, %c0_32] : memref<9x8x8xbf16, #tpu.memory_space<vmem>>, vector<1x8x8xbf16>
    %32 = vector.shape_cast %31 : vector<1x8x8xbf16> to vector<8x8xbf16>
    %cst_33 = arith.constant dense<0.000000e+00> : vector<64x8xf32>
    %33 = tpu.matmul %30, %32, %cst_33 {dimension_numbers = #tpu.dot_dimension_numbers<[1], [0], [0], [1], [0, 0, 1, 1], [], []>} : vector<64x8xbf16>, vector<8x8xbf16>, vector<64x8xf32> -> vector<64x8xf32>
    %34 = arith.addf %28, %33 : vector<64x8xf32>
    %c1_34 = arith.constant 1 : index
    %c0_35 = arith.constant 0 : index
    %c0_36 = arith.constant 0 : index
    %35 = vector.load %arg7[%c1_34, %c0_35, %c0_36] : memref<10x10x8xbf16, #tpu.memory_space<vmem>>, vector<8x8x8xbf16>
    %36 = vector.shape_cast %35 : vector<8x8x8xbf16> to vector<64x8xbf16>
    %c3 = arith.constant 3 : index
    %c0_37 = arith.constant 0 : index
    %c0_38 = arith.constant 0 : index
    %37 = vector.load %arg4[%c3, %c0_37, %c0_38] : memref<9x8x8xbf16, #tpu.memory_space<vmem>>, vector<1x8x8xbf16>
    %38 = vector.shape_cast %37 : vector<1x8x8xbf16> to vector<8x8xbf16>
    %cst_39 = arith.constant dense<0.000000e+00> : vector<64x8xf32>
    %39 = tpu.matmul %36, %38, %cst_39 {dimension_numbers = #tpu.dot_dimension_numbers<[1], [0], [0], [1], [0, 0, 1, 1], [], []>} : vector<64x8xbf16>, vector<8x8xbf16>, vector<64x8xf32> -> vector<64x8xf32>
    %40 = arith.addf %34, %39 : vector<64x8xf32>
    %c1_40 = arith.constant 1 : index
    %c1_41 = arith.constant 1 : index
    %c0_42 = arith.constant 0 : index
    %41 = vector.load %arg7[%c1_40, %c1_41, %c0_42] : memref<10x10x8xbf16, #tpu.memory_space<vmem>>, vector<8x8x8xbf16>
    %42 = vector.shape_cast %41 : vector<8x8x8xbf16> to vector<64x8xbf16>
    %c4 = arith.constant 4 : index
    %c0_43 = arith.constant 0 : index
    %c0_44 = arith.constant 0 : index
    %43 = vector.load %arg4[%c4, %c0_43, %c0_44] : memref<9x8x8xbf16, #tpu.memory_space<vmem>>, vector<1x8x8xbf16>
    %44 = vector.shape_cast %43 : vector<1x8x8xbf16> to vector<8x8xbf16>
    %cst_45 = arith.constant dense<0.000000e+00> : vector<64x8xf32>
    %45 = tpu.matmul %42, %44, %cst_45 {dimension_numbers = #tpu.dot_dimension_numbers<[1], [0], [0], [1], [0, 0, 1, 1], [], []>} : vector<64x8xbf16>, vector<8x8xbf16>, vector<64x8xf32> -> vector<64x8xf32>
    %46 = arith.addf %40, %45 : vector<64x8xf32>
    %c1_46 = arith.constant 1 : index
    %c2_47 = arith.constant 2 : index
    %c0_48 = arith.constant 0 : index
    %47 = vector.load %arg7[%c1_46, %c2_47, %c0_48] : memref<10x10x8xbf16, #tpu.memory_space<vmem>>, vector<8x8x8xbf16>
    %48 = vector.shape_cast %47 : vector<8x8x8xbf16> to vector<64x8xbf16>
    %c5 = arith.constant 5 : index
    %c0_49 = arith.constant 0 : index
    %c0_50 = arith.constant 0 : index
    %49 = vector.load %arg4[%c5, %c0_49, %c0_50] : memref<9x8x8xbf16, #tpu.memory_space<vmem>>, vector<1x8x8xbf16>
    %50 = vector.shape_cast %49 : vector<1x8x8xbf16> to vector<8x8xbf16>
    %cst_51 = arith.constant dense<0.000000e+00> : vector<64x8xf32>
    %51 = tpu.matmul %48, %50, %cst_51 {dimension_numbers = #tpu.dot_dimension_numbers<[1], [0], [0], [1], [0, 0, 1, 1], [], []>} : vector<64x8xbf16>, vector<8x8xbf16>, vector<64x8xf32> -> vector<64x8xf32>
    %52 = arith.addf %46, %51 : vector<64x8xf32>
    %c2_52 = arith.constant 2 : index
    %c0_53 = arith.constant 0 : index
    %c0_54 = arith.constant 0 : index
    %53 = vector.load %arg7[%c2_52, %c0_53, %c0_54] : memref<10x10x8xbf16, #tpu.memory_space<vmem>>, vector<8x8x8xbf16>
    %54 = vector.shape_cast %53 : vector<8x8x8xbf16> to vector<64x8xbf16>
    %c6 = arith.constant 6 : index
    %c0_55 = arith.constant 0 : index
    %c0_56 = arith.constant 0 : index
    %55 = vector.load %arg4[%c6, %c0_55, %c0_56] : memref<9x8x8xbf16, #tpu.memory_space<vmem>>, vector<1x8x8xbf16>
    %56 = vector.shape_cast %55 : vector<1x8x8xbf16> to vector<8x8xbf16>
    %cst_57 = arith.constant dense<0.000000e+00> : vector<64x8xf32>
    %57 = tpu.matmul %54, %56, %cst_57 {dimension_numbers = #tpu.dot_dimension_numbers<[1], [0], [0], [1], [0, 0, 1, 1], [], []>} : vector<64x8xbf16>, vector<8x8xbf16>, vector<64x8xf32> -> vector<64x8xf32>
    %58 = arith.addf %52, %57 : vector<64x8xf32>
    %c2_58 = arith.constant 2 : index
    %c1_59 = arith.constant 1 : index
    %c0_60 = arith.constant 0 : index
    %59 = vector.load %arg7[%c2_58, %c1_59, %c0_60] : memref<10x10x8xbf16, #tpu.memory_space<vmem>>, vector<8x8x8xbf16>
    %60 = vector.shape_cast %59 : vector<8x8x8xbf16> to vector<64x8xbf16>
    %c7 = arith.constant 7 : index
    %c0_61 = arith.constant 0 : index
    %c0_62 = arith.constant 0 : index
    %61 = vector.load %arg4[%c7, %c0_61, %c0_62] : memref<9x8x8xbf16, #tpu.memory_space<vmem>>, vector<1x8x8xbf16>
    %62 = vector.shape_cast %61 : vector<1x8x8xbf16> to vector<8x8xbf16>
    %cst_63 = arith.constant dense<0.000000e+00> : vector<64x8xf32>
    %63 = tpu.matmul %60, %62, %cst_63 {dimension_numbers = #tpu.dot_dimension_numbers<[1], [0], [0], [1], [0, 0, 1, 1], [], []>} : vector<64x8xbf16>, vector<8x8xbf16>, vector<64x8xf32> -> vector<64x8xf32>
    %64 = arith.addf %58, %63 : vector<64x8xf32>
    %c2_64 = arith.constant 2 : index
    %c2_65 = arith.constant 2 : index
    %c0_66 = arith.constant 0 : index
    %65 = vector.load %arg7[%c2_64, %c2_65, %c0_66] : memref<10x10x8xbf16, #tpu.memory_space<vmem>>, vector<8x8x8xbf16>
    %66 = vector.shape_cast %65 : vector<8x8x8xbf16> to vector<64x8xbf16>
    %c8 = arith.constant 8 : index
    %c0_67 = arith.constant 0 : index
    %c0_68 = arith.constant 0 : index
    %67 = vector.load %arg4[%c8, %c0_67, %c0_68] : memref<9x8x8xbf16, #tpu.memory_space<vmem>>, vector<1x8x8xbf16>
    %68 = vector.shape_cast %67 : vector<1x8x8xbf16> to vector<8x8xbf16>
    %cst_69 = arith.constant dense<0.000000e+00> : vector<64x8xf32>
    %69 = tpu.matmul %66, %68, %cst_69 {dimension_numbers = #tpu.dot_dimension_numbers<[1], [0], [0], [1], [0, 0, 1, 1], [], []>} : vector<64x8xbf16>, vector<8x8xbf16>, vector<64x8xf32> -> vector<64x8xf32>
    %70 = arith.addf %64, %69 : vector<64x8xf32>
    %c0_70 = arith.constant 0 : index
    %c0_71 = arith.constant 0 : index
    %c0_72 = arith.constant 0 : index
    %71 = vector.load %arg5[%c0_70, %c0_71, %c0_72] : memref<1x64x8xf32, #tpu.memory_space<vmem>>, vector<1x64x8xf32>
    %72 = vector.shape_cast %71 : vector<1x64x8xf32> to vector<64x8xf32>
    %73 = vector.shape_cast %70 : vector<64x8xf32> to vector<1x64x8xf32>
    tpu.vector_store %arg5[%c0_70, %c0_71, %c0_72], %73 {strides = array<i32>} : memref<1x64x8xf32, #tpu.memory_space<vmem>>, vector<1x64x8xf32>,
    %cst_73 = arith.constant dense<0.000000e+00> : vector<8xf32>
    %74 = vector.multi_reduction <add>, %70, %cst_73 [0] : vector<64x8xf32> to vector<8xf32>
    %75 = vector.shape_cast %74 : vector<8xf32> to vector<1x8xf32>
    %c0_74 = arith.constant 0 : index
    %c0_75 = arith.constant 0 : index
    %c0_76 = arith.constant 0 : index
    %76 = vector.load %arg6[%c0_74, %c0_75, %c0_76] : memref<1x2x8xf32, #tpu.memory_space<vmem>>, vector<1x1x8xf32>
    %77 = vector.shape_cast %76 : vector<1x1x8xf32> to vector<1x8xf32>
    %78 = vector.shape_cast %75 : vector<1x8xf32> to vector<1x1x8xf32>
    tpu.vector_store %arg6[%c0_74, %c0_75, %c0_76], %78 {strides = array<i32>} : memref<1x2x8xf32, #tpu.memory_space<vmem>>, vector<1x1x8xf32>,
    %79 = arith.mulf %70, %70 : vector<64x8xf32>
    %cst_77 = arith.constant dense<0.000000e+00> : vector<8xf32>
    %80 = vector.multi_reduction <add>, %79, %cst_77 [0] : vector<64x8xf32> to vector<8xf32>
    %81 = vector.shape_cast %80 : vector<8xf32> to vector<1x8xf32>
    %c0_78 = arith.constant 0 : index
    %c1_79 = arith.constant 1 : index
    %c0_80 = arith.constant 0 : index
    %82 = vector.load %arg6[%c0_78, %c1_79, %c0_80] : memref<1x2x8xf32, #tpu.memory_space<vmem>>, vector<1x1x8xf32>
    %83 = vector.shape_cast %82 : vector<1x1x8xf32> to vector<1x8xf32>
    %84 = vector.shape_cast %81 : vector<1x8xf32> to vector<1x1x8xf32>
    tpu.vector_store %arg6[%c0_78, %c1_79, %c0_80], %84 {strides = array<i32>} : memref<1x2x8xf32, #tpu.memory_space<vmem>>, vector<1x1x8xf32>,
    return
  }
  func.func @transform_0(%arg0: i32) -> (i32, i32, i32, i32) {
    %c0_i32 = arith.constant 0 : i32
    %c0_i32_0 = arith.constant 0 : i32
    %c0_i32_1 = arith.constant 0 : i32
    %c0_i32_2 = arith.constant 0 : i32
    return %arg0, %c0_i32, %c0_i32_0, %c0_i32_1 : i32, i32, i32, i32
  }
  func.func @transform_1(%arg0: i32) -> (i32, i32) {
    %c0_i32 = arith.constant 0 : i32
    %c0_i32_0 = arith.constant 0 : i32
    %c0_i32_1 = arith.constant 0 : i32
    return %c0_i32, %c0_i32_0 : i32, i32
  }
  func.func @transform_2(%arg0: i32) -> (i32, i32) {
    %c0_i32 = arith.constant 0 : i32
    %c0_i32_0 = arith.constant 0 : i32
    %c0_i32_1 = arith.constant 0 : i32
    return %c0_i32, %c0_i32_0 : i32, i32
  }
  func.func @transform_3(%arg0: i32) -> (i32, i32, i32) {
    %c0_i32 = arith.constant 0 : i32
    %c0_i32_0 = arith.constant 0 : i32
    %c0_i32_1 = arith.constant 0 : i32
    %c0_i32_2 = arith.constant 0 : i32
    return %c0_i32, %c0_i32_0, %c0_i32_1 : i32, i32, i32
  }
  func.func @transform_4(%arg0: i32) -> (i32, i32, i32) {
    %c0_i32 = arith.constant 0 : i32
    %c0_i32_0 = arith.constant 0 : i32
    %c0_i32_1 = arith.constant 0 : i32
    return %arg0, %c0_i32, %c0_i32_0 : i32, i32, i32
  }
  func.func @transform_5(%arg0: i32) -> (i32, i32, i32) {
    %c0_i32 = arith.constant 0 : i32
    %c0_i32_0 = arith.constant 0 : i32
    %c0_i32_1 = arith.constant 0 : i32
    return %arg0, %c0_i32, %c0_i32_0 : i32, i32, i32
  }
}

</mosaic_0001>

<bundles_post_ra>
// kernel: _lambda_.5
= control target key start
LH: loop header
LB: loop body
LE: loop exit
PB: predicated region body
PF: predicated region fallthrough
CT: control target
= control target key end

     0   :  { %vm179_vm0 = vcmask 64512   ;;  %s483_s0 = inlined_call_operand.vmem [shape: f32[128,8], index: 0, kind: input, shape index: {}]   ;;  %s484_s1 = inlined_call_operand.vmem [shape: f32[1,8], index: 1, kind: input, shape index: {}]   ;;  %s485_s2 = inlined_call_operand.vmem [shape: f32[1,8], index: 2, kind: input, shape index: {}]   ;;  %s486_s3 = inlined_call_operand.vmem [shape: f32[128,8], index: 3, kind: input, shape index: {}]   ;;  %s487_s4 = inlined_call_operand.vmem [shape: f32[1,8], index: 4, kind: input, shape index: {}]   ;;  %s488_s5 = inlined_call_operand.vmem [shape: f32[1,8], index: 5, kind: input, shape index: {}]   ;;  %s489_s6 = inlined_call_operand.vmem [shape: f32[128,8], index: 6, kind: output, shape index: {}]  }
   0x1   :  { %v23_v0 = vld [vmem:[%s483_s0] sm:$0xff]  ;;  %v24_v8 = vld [vmem:[%s483_s0 + $0x8] sm:$0xff]  ;;  %v25_v10 = vld [vmem:[%s483_s0 + $0x10] sm:$0xff] }
   0x2   :  { %v245_v1 = vld [vmem:[%s484_s1] ss:$0 sm:$0xff]  ;;  %v86_v9 = vld [vmem:[%s486_s3 + $0x8] sm:$0xff]  ;;  %v87_v15 = vld [vmem:[%s486_s3 + $0x10] sm:$0xff] }
   0x3   :  { %v250_v2 = vld [vmem:[%s485_s2] ss:$0 sm:$0xff]  ;;  %v46_v3 = vmul.f32 %v245_v1, %v23_v0  ;;  %v47_v12 = vmul.f32 %v245_v1, %v24_v8  ;;  %v48_v14 = vmul.f32 %v245_v1, %v25_v10  ;;  %v26_v16 = vld [vmem:[%s483_s0 + $0x18] sm:$0xff]  ;;  %v28_v23 = vld [vmem:[%s483_s0 + $0x28] sm:$0xff] }
   0x4   :  { %v85_v4 = vld [vmem:[%s486_s3] sm:$0xff]  ;;  %v88_v17 = vld [vmem:[%s486_s3 + $0x18] sm:$0xff]  ;;  %v49_v19 = vmul.f32 %v245_v1, %v26_v16  ;;  %v90_v28 = vld [vmem:[%s486_s3 + $0x28] sm:$0xff]  ;;  %v51_v33 = vmul.f32 %v245_v1, %v28_v23 }
   0x5   :  { %v259_v5 = vld [vmem:[%s487_s4] ss:$0 sm:$0xff]  ;;  %v69_v11 = vadd.f32 %v250_v2, %v46_v3  ;;  %v70_v25 = vadd.f32 %v250_v2, %v47_v12  ;;  %v71_v26 = vadd.f32 %v250_v2, %v48_v14  ;;  %v29_v29 = vld [vmem:[%s483_s0 + $0x30] sm:$0xff]  ;;  %v30_v39 = vld [vmem:[%s483_s0 + $0x38] sm:$0xff] }
   0x6   :  { %v108_v6 = vmul.f32 %v259_v5, %v85_v4  ;;  %v265_v7 = vld [vmem:[%s488_s5] ss:$0 sm:$0xff]  ;;  %v109_v13 = vmul.f32 %v259_v5, %v86_v9  ;;  %v110_v18 = vmul.f32 %v259_v5, %v87_v15  ;;  %v111_v20 = vmul.f32 %v259_v5, %v88_v17  ;;  %v91_v30 = vld [vmem:[%s486_s3 + $0x30] sm:$0xff]  ;;  %v92_v44 = vld [vmem:[%s486_s3 + $0x38] sm:$0xff] }
   0x7   :  { %v27_v21 = vld [vmem:[%s483_s0 + $0x20] sm:$0xff]  ;;  %v72_v31 = vadd.f32 %v250_v2, %v49_v19  ;;  %v113_v34 = vmul.f32 %v259_v5, %v90_v28  ;;  %v74_v41 = vadd.f32 %v250_v2, %v51_v33  ;;  %v52_v42 = vmul.f32 %v245_v1, %v29_v29  ;;  %v32_v55 = vld [vmem:[%s483_s0 + $0x48] sm:$0xff]  ;;  %v33_v3 = vld [vmem:[%s483_s0 + $0x50] sm:$0xff] }
   0x8   :  { %v89_v22 = vld [vmem:[%s486_s3 + $0x20] sm:$0xff]  ;;  %v124_v24 = vadd.f32 %v108_v6, %v69_v11  ;;  %v50_v27 = vmul.f32 %v245_v1, %v27_v21  ;;  %v125_v36 = vadd.f32 %v109_v13, %v70_v25  ;;  %v126_v37 = vadd.f32 %v110_v18, %v71_v26  ;;  %v94_v60 = vld [vmem:[%s486_s3 + $0x48] sm:$0xff]  ;;  %v95_v4 = vld [vmem:[%s486_s3 + $0x50] sm:$0xff] }
   0x9   :  { %v112_v32 = vmul.f32 %v259_v5, %v89_v22  ;;  %v127_v40 = vadd.f32 %v111_v20, %v72_v31  ;;  %v114_v43 = vmul.f32 %v259_v5, %v91_v30  ;;  %v129_v50 = vadd.f32 %v113_v34, %v74_v41  ;;  %v31_v53 = vld [vmem:[%s483_s0 + $0x40] sm:$0xff]  ;;  %v34_v11 = vld [vmem:[%s483_s0 + $0x58] sm:$0xff]  ;;  %v36_v23 = vld [vmem:[%s483_s0 + $0x68] sm:$0xff] }
   0xa   :  { %v147_v35 = vadd.f32 %v265_v7, %v124_v24  ;;  %v73_v38 = vadd.f32 %v250_v2, %v50_v27  ;;  %v148_v46 = vadd.f32 %v265_v7, %v125_v36  ;;  %v149_v47 = vadd.f32 %v265_v7, %v126_v37  ;;  %v93_v54 = vld [vmem:[%s486_s3 + $0x40] sm:$0xff]  ;;  %v96_v12 = vld [vmem:[%s486_s3 + $0x58] sm:$0xff]  ;;  %v37_v33 = vld [vmem:[%s483_s0 + $0x70] sm:$0xff] }
   0xb   :  { %v150_v49 = vadd.f32 %v265_v7, %v127_v40  ;;  %v75_v51 = vadd.f32 %v250_v2, %v52_v42  ;;  %v53_v52 = vmul.f32 %v245_v1, %v30_v39  ;;  %v115_v59 = vmul.f32 %v259_v5, %v92_v44  ;;  %v35_v17 = vld [vmem:[%s483_s0 + $0x60] sm:$0xff]  ;;  %v99_v42 = vld [vmem:[%s486_s3 + $0x70] sm:$0xff] }
   0xc   :  { %v163_v45 = vmax.f32 %v147_v35, 0.0  ;;  %v128_v48 = vadd.f32 %v112_v32, %v73_v38  ;;  %v164_v56 = vmax.f32 %v148_v46, 0.0  ;;  %v165_v57 = vmax.f32 %v149_v47, 0.0  ;;  %v97_v22 = vld [vmem:[%s486_s3 + $0x60] sm:$0xff]  ;;  %v98_v32 = vld [vmem:[%s486_s3 + $0x68] sm:$0xff]  ;;  %v38_v47 = vld [vmem:[%s483_s0 + $0x78] sm:$0xff] }
   0xd   :  { %v166_v61 = vmax.f32 %v150_v49, 0.0  ;;  %v152_v62 = vadd.f32 %v265_v7, %v129_v50  ;;  %v130_v63 = vadd.f32 %v114_v43, %v75_v51  ;;  %v76_v0 = vadd.f32 %v250_v2, %v53_v52 }
   0xe   :  { %180 = vst.msk [vmem:[%s489_s6] sm:$0xff] %vm179_vm0, %v163_v45  ;;  %v151_v58 = vadd.f32 %v265_v7, %v128_v48  ;;  %181 = vst.msk [vmem:[%s489_s6 + $0x8] sm:$0xff] %vm179_vm0, %v164_v56  ;;  %v54_v8 = vmul.f32 %v245_v1, %v31_v53  ;;  %v116_v9 = vmul.f32 %v259_v5, %v93_v54  ;;  %v100_v48 = vld [vmem:[%s486_s3 + $0x78] sm:$0xff] }
   0xf   :  { %182 = vst.msk [vmem:[%s489_s6 + $0x10] sm:$0xff] %vm179_vm0, %v165_v57  ;;  %v55_v10 = vmul.f32 %v245_v1, %v32_v55  ;;  %183 = vst.msk [vmem:[%s489_s6 + $0x18] sm:$0xff] %vm179_vm0, %v166_v61  ;;  %v168_v13 = vmax.f32 %v152_v62, 0.0  ;;  %v153_v14 = vadd.f32 %v265_v7, %v130_v63  ;;  %v131_v15 = vadd.f32 %v115_v59, %v76_v0 }
  0x10   :  { %v167_v6 = vmax.f32 %v151_v58, 0.0  ;;  %v117_v16 = vmul.f32 %v259_v5, %v94_v60  ;;  %v77_v18 = vadd.f32 %v250_v2, %v54_v8  ;;  %v56_v20 = vmul.f32 %v245_v1, %v33_v3 }
  0x11   :  { %v78_v19 = vadd.f32 %v250_v2, %v55_v10  ;;  %v118_v21 = vmul.f32 %v259_v5, %v95_v4  ;;  %185 = vst.msk [vmem:[%s489_s6 + $0x28] sm:$0xff] %vm179_vm0, %v168_v13  ;;  %v169_v24 = vmax.f32 %v153_v14, 0.0  ;;  %v154_v25 = vadd.f32 %v265_v7, %v131_v15 }
  0x12   :  { %184 = vst.msk [vmem:[%s489_s6 + $0x20] sm:$0xff] %vm179_vm0, %v167_v6  ;;  %v57_v26 = vmul.f32 %v245_v1, %v34_v11  ;;  %v119_v27 = vmul.f32 %v259_v5, %v96_v12  ;;  %v132_v28 = vadd.f32 %v116_v9, %v77_v18  ;;  %v79_v30 = vadd.f32 %v250_v2, %v56_v20 }
  0x13   :  { %v133_v29 = vadd.f32 %v117_v16, %v78_v19  ;;  %v58_v31 = vmul.f32 %v245_v1, %v35_v17  ;;  %186 = vst.msk [vmem:[%s489_s6 + $0x30] sm:$0xff] %vm179_vm0, %v169_v24  ;;  %v170_v34 = vmax.f32 %v154_v25, 0.0  ;;  %v120_v36 = vmul.f32 %v259_v5, %v97_v22 }
  0x14   :  { %v80_v35 = vadd.f32 %v250_v2, %v57_v26  ;;  %v59_v37 = vmul.f32 %v245_v1, %v36_v23  ;;  %v155_v38 = vadd.f32 %v265_v7, %v132_v28  ;;  %v134_v40 = vadd.f32 %v118_v21, %v79_v30 }
  0x15   :  { %v156_v39 = vadd.f32 %v265_v7, %v133_v29  ;;  %v81_v41 = vadd.f32 %v250_v2, %v58_v31  ;;  %187 = vst.msk [vmem:[%s489_s6 + $0x38] sm:$0xff] %vm179_vm0, %v170_v34  ;;  %v121_v45 = vmul.f32 %v259_v5, %v98_v32  ;;  %v60_v46 = vmul.f32 %v245_v1, %v37_v33 }
  0x16   :  { %v135_v43 = vadd.f32 %v119_v27, %v80_v35  ;;  %v82_v44 = vadd.f32 %v250_v2, %v59_v37  ;;  %v171_v49 = vmax.f32 %v155_v38, 0.0  ;;  %v157_v51 = vadd.f32 %v265_v7, %v134_v40 }
  0x17   :  { %v172_v50 = vmax.f32 %v156_v39, 0.0  ;;  %v136_v52 = vadd.f32 %v120_v36, %v81_v41  ;;  %v83_v55 = vadd.f32 %v250_v2, %v60_v46  ;;  %v122_v56 = vmul.f32 %v259_v5, %v99_v42 }
  0x18   :  { %v158_v53 = vadd.f32 %v265_v7, %v135_v43  ;;  %v137_v54 = vadd.f32 %v121_v45, %v82_v44  ;;  %188 = vst.msk [vmem:[%s489_s6 + $0x40] sm:$0xff] %vm179_vm0, %v171_v49  ;;  %v173_v57 = vmax.f32 %v157_v51, 0.0  ;;  %v61_v59 = vmul.f32 %v245_v1, %v38_v47 }
  0x19   :  { %189 = vst.msk [vmem:[%s489_s6 + $0x48] sm:$0xff] %vm179_vm0, %v172_v50  ;;  %v159_v58 = vadd.f32 %v265_v7, %v136_v52  ;;  %v123_v60 = vmul.f32 %v259_v5, %v100_v48  ;;  %v138_v63 = vadd.f32 %v122_v56, %v83_v55 }
  0x1a   :  { %v174_v61 = vmax.f32 %v158_v53, 0.0  ;;  %v160_v62 = vadd.f32 %v265_v7, %v137_v54  ;;  %190 = vst.msk [vmem:[%s489_s6 + $0x50] sm:$0xff] %vm179_vm0, %v173_v57  ;;  %v84_v3 = vadd.f32 %v250_v2, %v61_v59 }
  0x1b   :  { %v175_v0 = vmax.f32 %v159_v58, 0.0  ;;  %v161_v5 = vadd.f32 %v265_v7, %v138_v63 }
  0x1c   :  { %191 = vst.msk [vmem:[%s489_s6 + $0x58] sm:$0xff] %vm179_vm0, %v174_v61  ;;  %v176_v1 = vmax.f32 %v160_v62, 0.0  ;;  %v139_v4 = vadd.f32 %v123_v60, %v84_v3 }
  0x1d   :  { %192 = vst.msk [vmem:[%s489_s6 + $0x60] sm:$0xff] %vm179_vm0, %v175_v0  ;;  %v177_v2 = vmax.f32 %v161_v5, 0.0 }
  0x1e   :  { %193 = vst.msk [vmem:[%s489_s6 + $0x68] sm:$0xff] %vm179_vm0, %v176_v1  ;;  %v162_v6 = vadd.f32 %v265_v7, %v139_v4 }
  0x1f   :  { %194 = vst.msk [vmem:[%s489_s6 + $0x70] sm:$0xff] %vm179_vm0, %v177_v2 }
  0x20   :  { %v178_v8 = vmax.f32 %v162_v6, 0.0 }
  0x22   :  { %195 = vst.msk [vmem:[%s489_s6 + $0x78] sm:$0xff] %vm179_vm0, %v178_v8 }

// kernel: _lambda_.3
= control target key start
LH: loop header
LB: loop body
LE: loop exit
PB: predicated region body
PF: predicated region fallthrough
CT: control target
= control target key end

     0   :  { %s2252_s21 = smov 0   ;;  %s2631_s0 = inlined_call_operand.vmem [shape: bf16[2,9,9,16], index: 0, kind: input, shape index: {}]   ;;  %s2632_s1 = inlined_call_operand.vmem [shape: bf16[9,4,8], index: 1, kind: input, shape index: {}]   ;;  %s2633_s2 = inlined_call_operand.vmem [shape: bf16[4,8], index: 2, kind: input, shape index: {}]   ;;  %s2634_s3 = inlined_call_operand.vmem [shape: f32[2,64,8], index: 3, kind: output, shape index: {0}]   ;;  %s2635_s4 = inlined_call_operand.vmem [shape: f32[2,2,8], index: 4, kind: output, shape index: {1}]   ;;  %s2636_s5 = inlined_call_operand.vmem [shape: f32[2,64,8], index: 5, kind: output, shape index: {2}]   ;;  %s2637_s6 = inlined_call_operand.vmem [shape: f32[2,2,8], index: 6, kind: output, shape index: {3}]  }
   0x1 LB: > { %s1850_s22 = sadd.s32 4294967295, %s2212_s21   ;;  %p1854_p0 = scmp.ge.s32.totalorder %s2212_s21, 1  ;;  %s2212_s21 = sphi %s2252_s21, %s17_s21  }
   0x2   : > { %p219_p1 = scmp.lt.s32.totalorder %s2212_s21, 3 }
   0x4   : > { %p220_p2 = pnand %p1854_p0, %p219_p1 }
   0x5   : > { %p262_p3 = scmp.lt.s32.totalorder (!%p220_p2), %s1850_s22, 1  ;;  %vm338_vm0 = vcmask (!%p220_p2), 1041408   ;;  %v1889_v0 = vld [vmem:[%s2632_s1 + $0x8] sm:$0x3] (!%p220_p2)  ;;  %v1862_v2 = vld [vmem:[%s2632_s1 + $0x2] sm:$0x3] (!%p220_p2) }
   0x6   : > { %223 = sbr.rel (%p220_p2) target bundleno = 451 (0x1c3), region = 32  ;;  %2176 = vmatprep.subr.msk.bf16.mxu0 (!%p220_p2), %vm338_vm0, %v1889_v0  ;;  %v841_v1 = vsel (!%p220_p2), %vm338_vm0, %v1889_v0, 0  ;;  %v2273_v3 = vld [vmem:[%s2632_s1 + $0xa] sm:$0x3] (!%p220_p2)  ;;  %2172 = vmatprep.subr.msk.bf16.mxu1 (!%p220_p2), %vm338_vm0, %v1862_v2  ;;  %v340_v4 = vsel (!%p220_p2), %vm338_vm0, %v1862_v2, 0  ;;  %s2214_s11 = smov (!%p220_p2), 116  }
   0x7   : > { %2049 = vmatpush3.bf16.msra.mxu0 (!%p220_p2), %v841_v1  ;;  %v2280_v5 = vld [vmem:[%s2632_s1] sm:$0x3] (!%p220_p2)  ;;  %2009 = vmatpush3.bf16.msra.mxu1 (!%p220_p2), %v340_v4  ;;  %s2215_s12 = smov (!%p220_p2), 124   ;;  %vm503_vm1 = vsmask.f32 (!%p220_p2), 3328  ;;  %s2216_s13 = smov (!%p220_p2), 120  }
   0x8   : > { %2177 = vmatprep.subr.msk.bf16.mxu0 (!%p220_p2), %vm338_vm0, %v2273_v3  ;;  %2173 = vmatprep.subr.msk.bf16.mxu1 (!%p220_p2), %vm338_vm0, %v2280_v5  ;;  %vm504_vm2 = vsmask.f32 (!%p220_p2), 7440  ;;  %vm325_vm4 = vcmask (!%p220_p2), 31744   ;;  %v1907_v35 = vld [vmem:[%s2632_s1 + $0xc] sm:$0x3] (!%p220_p2)  ;;  %vm1461_vm5 = vcmask (!%p220_p2), 64512  }
   0x9   : > { %vm2327_vm3 = vmor (!%p220_p2), %vm503_vm1, %vm504_vm2  ;;  %vm1491_vm6 = vcmask (!%p220_p2), 57344  }
   0xd   : > { %s2641_s22 = smov (!%p262_p3, %s1850_s22), 1 }
   0xe   : > { %s2182_s7 = smul.u32 72, %s2641_s22  ;;  %s1956_s28 = sshll.u32 %s2641_s22, 6 }
  0x10   : > { %s2290_s10 = scalar_lea.vmem %s2631_s0, %s2182_s7  ;;  %s2548_s7 = scalar_lea.vmem %s2636_s5, %s1956_s28 }
  0x11   : > { %v2293_v6 = vld [vmem:[%s2290_s10] ss:$8 sps:$4 sm:$0xff]   ;;  %v2296_v7 = vld [vmem:[%s2290_s10 + $0x10] ss:$8 sps:$4 sm:$0xff]   ;;  %v488_v11 = vld [vmem:[%s2290_s10 + $0x4] sm:$0x1] }
  0x12   : > { %820 = vrot.lane.b32.xlu0 %v2293_v6, %s2214_s11  ;;  %317 = vrot.lane.b32.xlu1 %v2293_v6, %s2215_s12  ;;  %v2303_v8 = vld [vmem:[%s2290_s10 + $0x20] ss:$8 sps:$4 sm:$0xff]   ;;  %v2306_v9 = vld [vmem:[%s2290_s10 + $0x30] ss:$8 sps:$4 sm:$0xff]   ;;  %v516_v16 = vshll.u32 %v488_v11, 16 }
  0x13   : > { %v487_v10 = vld [vmem:[%s2290_s10] sm:$0xf]  ;;  %v489_v12 = vld [vmem:[%s2290_s10 + $0x8] sm:$0xf]  ;;  %v490_v13 = vld [vmem:[%s2290_s10 + $0xc] sm:$0x1] }
  0x14   : > { %v507_v14 = vshrl.u32 %v487_v10, 16  ;;  %v510_v15 = vshll.u32 %v487_v10, 16  ;;  %v521_v17 = vshrl.u32 %v489_v12, 16  ;;  %v524_v18 = vshll.u32 %v489_v12, 16  ;;  %v491_v20 = vld [vmem:[%s2290_s10 + $0x10] sm:$0xf] }
  0x15   : > { %v530_v19 = vshll.u32 %v490_v13, 16  ;;  %v492_v23 = vld [vmem:[%s2290_s10 + $0x14] sm:$0x1]  ;;  %v493_v24 = vld [vmem:[%s2290_s10 + $0x18] sm:$0xf]  ;;  %v518_v25 = vrot.slane %v516_v16, 5 }
  0x16   : > { %822 = vrot.lane.b32.xlu0 %v2296_v7, %s2214_s11  ;;  %319 = vrot.lane.b32.xlu1 %v2296_v7, %s2215_s12  ;;  %v509_v21 = vrot.slane %v507_v14, 4  ;;  %v512_v22 = vrot.slane %v510_v15, 5  ;;  %v523_v26 = vrot.slane %v521_v17, 4  ;;  %v526_v27 = vrot.slane %v524_v18, 5  ;;  %v494_v29 = vld [vmem:[%s2290_s10 + $0x1c] sm:$0x1] }
  0x17   : > { %v532_v28 = vrot.slane %v530_v19, 5  ;;  %v535_v31 = vshrl.u32 %v491_v20, 16  ;;  %v538_v32 = vshll.u32 %v491_v20, 16  ;;  %v544_v33 = vshll.u32 %v492_v23, 16  ;;  %v495_v34 = vld [vmem:[%s2290_s10 + $0x20] sm:$0xf] }
  0x18   : > { %v513_v30 = vor.u32 %v512_v22, %v509_v21  ;;  %v527_v36 = vor.u32 %v526_v27, %v523_v26  ;;  %v549_v37 = vshrl.u32 %v493_v24, 16  ;;  %v552_v38 = vshll.u32 %v493_v24, 16  ;;  %v496_v40 = vld [vmem:[%s2290_s10 + $0x24] sm:$0x1]  ;;  %v497_v45 = vld [vmem:[%s2290_s10 + $0x28] sm:$0xf] }
  0x19   : > { %v558_v39 = vshll.u32 %v494_v29, 16  ;;  %v537_v42 = vrot.slane %v535_v31, 4  ;;  %v540_v43 = vrot.slane %v538_v32, 5  ;;  %v546_v44 = vrot.slane %v544_v33, 5  ;;  %v498_v52 = vld [vmem:[%s2290_s10 + $0x2c] sm:$0x1] }
  0x1a   : > { %824 = vrot.lane.b32.xlu0 %v2303_v8, %s2214_s11  ;;  %826 = vrot.lane.b32.xlu1 %v2306_v9, %s2214_s11  ;;  %v514_v41 = vrot.slane %v513_v30, 4  ;;  %v528_v46 = vrot.slane %v527_v36, 4  ;;  %v551_v47 = vrot.slane %v549_v37, 4  ;;  %v554_v48 = vrot.slane %v552_v38, 5  ;;  %v499_v59 = vld [vmem:[%s2290_s10 + $0x30] sm:$0xf] }
  0x1b   : > { %v560_v49 = vrot.slane %v558_v39, 5  ;;  %v541_v51 = vor.u32 %v540_v43, %v537_v42  ;;  %v563_v53 = vshrl.u32 %v495_v34, 16  ;;  %v566_v54 = vshll.u32 %v495_v34, 16  ;;  %v500_v60 = vld [vmem:[%s2290_s10 + $0x34] sm:$0x1] }
  0x1c   : > { %v519_v50 = vsel %vm2327_vm3, %v514_v41, %v518_v25  ;;  %v533_v55 = vsel %vm2327_vm3, %v528_v46, %v532_v28  ;;  %v555_v56 = vor.u32 %v554_v48, %v551_v47  ;;  %v572_v57 = vshll.u32 %v496_v40, 16  ;;  %v501_v1 = vld [vmem:[%s2290_s10 + $0x38] sm:$0xf]  ;;  %v502_v14 = vld [vmem:[%s2290_s10 + $0x3c] sm:$0x1] }
  0x1d   : > { %v577_v58 = vshrl.u32 %v497_v45, 16  ;;  %v2344_v61 = vcombine.low %v519_v50, %v533_v55  ;;  %v542_v62 = vrot.slane %v541_v51, 4  ;;  %v565_v63 = vrot.slane %v563_v53, 4  ;;  %v2365_v42 = vld [vmem:[%s2290_s10 + $0x8] ss:$8 sps:$4 sm:$0xff]  }
  0x1e   : > { %321 = vrot.lane.b32.xlu0 %v2303_v8, %s2215_s12  ;;  %323 = vrot.lane.b32.xlu1 %v2306_v9, %s2215_s12  ;;  %v568_v0 = vrot.slane %v566_v54, 5  ;;  %v556_v2 = vrot.slane %v555_v56, 4  ;;  %v580_v10 = vshll.u32 %v497_v45, 16  ;;  %v586_v13 = vshll.u32 %v498_v52, 16  ;;  %v2380_v47 = vld [vmem:[%s2290_s10 + $0x18] ss:$8 sps:$4 sm:$0xff]  }
  0x1f   : > { %v579_v4 = vrot.slane %v577_v58, 4  ;;  %v547_v11 = vsel %vm2327_vm3, %v542_v62, %v546_v44  ;;  %v591_v15 = vshrl.u32 %v499_v59, 16  ;;  %v574_v17 = vrot.slane %v572_v57, 5  ;;  %v2385_v48 = vld [vmem:[%s2290_s10 + $0x28] ss:$8 sps:$4 sm:$0xff]  }
  0x20   : > { %v569_v12 = vor.u32 %v568_v0, %v565_v63  ;;  %v561_v16 = vsel %vm2327_vm3, %v556_v2, %v560_v49  ;;  %v582_v18 = vrot.slane %v580_v10, 5  ;;  %v594_v19 = vshll.u32 %v499_v59, 16  ;;  %v2394_v49 = vld [vmem:[%s2290_s10 + $0x38] ss:$8 sps:$4 sm:$0xff]   ;;  %v1921_v52 = vld [vmem:[%s2290_s10 + $0x8] sm:$0xf] }
  0x21   : > { %v2354_v20 = vcombine.low %v547_v11, %v561_v16  ;;  %v593_v22 = vrot.slane %v591_v15, 4  ;;  %v600_v23 = vshll.u32 %v500_v60, 16  ;;  %v588_v25 = vrot.slane %v586_v13, 5  ;;  %v2202_v50 = vld [vmem:[%s2290_s10] ss:$8 sps:$4 sm:$0xff]  }
  0x22   : > { %918 = vrot.lane.b32.xlu0 %v2344_v61, %s2216_s13  ;;  %v570_v21 = vrot.slane %v569_v12, 4  ;;  %v583_v24 = vor.u32 %v582_v18, %v579_v4  ;;  %v596_v26 = vrot.slane %v594_v19, 5  ;;  %v605_v27 = vshrl.u32 %v501_v1, 16  ;;  %v2204_v51 = vld [vmem:[%s2290_s10 + $0x20] ss:$8 sps:$4 sm:$0xff]  }
  0x23   : > { %920 = vrot.lane.b32.xlu1 %v2354_v20, %s2216_s13  ;;  %v608_v28 = vshll.u32 %v501_v1, 16  ;;  %v614_v29 = vshll.u32 %v502_v14, 16  ;;  %v602_v34 = vrot.slane %v600_v23, 5  ;;  %v1923_v53 = vld [vmem:[%s2290_s10 + $0x10] sm:$0xf]  ;;  %v1248_v54 = vshrl.u32 %v1921_v52, 16 }
  0x24   : > { %v575_v30 = vsel %vm2327_vm3, %v570_v21, %v574_v17  ;;  %v584_v31 = vrot.slane %v583_v24, 4  ;;  %v597_v32 = vor.u32 %v596_v26, %v593_v22  ;;  %v607_v33 = vrot.slane %v605_v27, 4  ;;  %v1925_v58 = vld [vmem:[%s2290_s10 + $0x18] sm:$0xf]  ;;  %v1927_v4 = vld [vmem:[%s2290_s10 + $0x20] sm:$0xf] }
  0x25   : > { %v610_v36 = vrot.slane %v608_v28, 5  ;;  %v616_v41 = vrot.slane %v614_v29, 5  ;;  %v1251_v55 = vshll.u32 %v1921_v52, 16  ;;  %v1262_v56 = vshrl.u32 %v1923_v53, 16  ;;  %v2203_v59 = vld [vmem:[%s2290_s10 + $0x10] ss:$8 sps:$4 sm:$0xff]  }
  0x26   : > { %v589_v37 = vsel %vm2327_vm3, %v584_v31, %v588_v25  ;;  %v598_v38 = vrot.slane %v597_v32, 4  ;;  %v1265_v57 = vshll.u32 %v1923_v53, 16  ;;  %v1276_v60 = vshrl.u32 %v1925_v58, 16  ;;  %v1922_v10 = vld [vmem:[%s2290_s10 + $0xc] sm:$0x1] }
  0x27   : > { %v2362_v39 = vcombine.low %v575_v30, %v589_v37  ;;  %v611_v40 = vor.u32 %v610_v36, %v607_v33  ;;  %v1279_v62 = vshll.u32 %v1925_v58, 16  ;;  %v1250_v63 = vrot.slane %v1248_v54, 4  ;;  %v1924_v11 = vld [vmem:[%s2290_s10 + $0x14] sm:$0x1]  ;;  %v2205_v14 = vld [vmem:[%s2290_s10 + $0x30] ss:$8 sps:$4 sm:$0xff]  }
  0x28   : > { %v603_v43 = vsel %vm2327_vm3, %v598_v38, %v602_v34  ;;  %v1253_v0 = vrot.slane %v1251_v55, 5  ;;  %v1264_v1 = vrot.slane %v1262_v56, 4  ;;  %v1267_v2 = vrot.slane %v1265_v57, 5  ;;  %v1926_v19 = vld [vmem:[%s2290_s10 + $0x1c] sm:$0x1] }
  0x29   : > { %922 = vrot.lane.b32.xlu0 %v2362_v39, %s2216_s13  ;;  %v612_v44 = vrot.slane %v611_v40, 4  ;;  %v1278_v12 = vrot.slane %v1276_v60, 4  ;;  %v1281_v13 = vrot.slane %v1279_v62, 5  ;;  %v1257_v16 = vshll.u32 %v1922_v10, 16  ;;  %v1928_v21 = vld [vmem:[%s2290_s10 + $0x24] sm:$0x1] }
  0x2a   : > { %v1254_v15 = vor.u32 %v1253_v0, %v1250_v63  ;;  %v1268_v17 = vor.u32 %v1267_v2, %v1264_v1  ;;  %v1271_v18 = vshll.u32 %v1924_v11, 16  ;;  %v1285_v23 = vshll.u32 %v1926_v19, 16  ;;  %v1929_v34 = vld [vmem:[%s2290_s10 + $0x28] sm:$0xf]  ;;  %v1931_v40 = vld [vmem:[%s2290_s10 + $0x30] sm:$0xf] }
  0x2b   : > { %v617_v45 = vsel %vm2327_vm3, %v612_v44, %v616_v41  ;;  %v1282_v22 = vor.u32 %v1281_v13, %v1278_v12  ;;  %v1290_v24 = vshrl.u32 %v1927_v4, 16  ;;  %v1293_v25 = vshll.u32 %v1927_v4, 16  ;;  %v1933_v55 = vld [vmem:[%s2290_s10 + $0x38] sm:$0xf]  ;;  %v1930_v57 = vld [vmem:[%s2290_s10 + $0x2c] sm:$0x1] }
  0x2c   : > { %v2373_v46 = vcombine.low %v603_v43, %v617_v45  ;;  %v1255_v26 = vrot.slane %v1254_v15, 4  ;;  %v1259_v27 = vrot.slane %v1257_v16, 5  ;;  %v1269_v28 = vrot.slane %v1268_v17, 4  ;;  %v1932_v58 = vld [vmem:[%s2290_s10 + $0x34] sm:$0x1] }
  0x2d   : > { %1135 = vrot.lane.b32.xlu0 %v2365_v42, %s2215_s12  ;;  %v1273_v29 = vrot.slane %v1271_v18, 5  ;;  %v1283_v30 = vrot.slane %v1282_v22, 4  ;;  %v1287_v31 = vrot.slane %v1285_v23, 5  ;;  %v1292_v32 = vrot.slane %v1290_v24, 4  ;;  %v1934_v1 = vld [vmem:[%s2290_s10 + $0x3c] sm:$0x1] }
  0x2e   : > { %924 = vrot.lane.b32.xlu1 %v2373_v46, %s2216_s13  ;;  %v1295_v33 = vrot.slane %v1293_v25, 5  ;;  %v1260_v36 = vsel %vm2327_vm3, %v1255_v26, %v1259_v27  ;;  %v1299_v38 = vshll.u32 %v1928_v21, 16  ;;  %v1304_v41 = vshrl.u32 %v1929_v34, 16  ;;  %v1935_v10 = vld [vmem:[%s2290_s10 + $0x40] sm:$0xf] }
  0x2f   : > { %v1274_v37 = vsel %vm2327_vm3, %v1269_v28, %v1273_v29  ;;  %v1288_v44 = vsel %vm2327_vm3, %v1283_v30, %v1287_v31  ;;  %v1318_v53 = vshrl.u32 %v1931_v40, 16  ;;  %v1321_v54 = vshll.u32 %v1931_v40, 16  ;;  %v1936_v11 = vld [vmem:[%s2290_s10 + $0x44] sm:$0x1]  ;;  %s2553_s10 = scalar_lea.vmem %s2634_s3, %s1956_s28 }
  0x30   : > { %v2424_v43 = vcombine.low %v1260_v36, %v1274_v37  ;;  %v1296_v45 = vor.u32 %v1295_v33, %v1292_v32  ;;  %v1306_v52 = vrot.slane %v1304_v41, 4  ;;  %v1313_v60 = vshll.u32 %v1930_v57, 16 }
  0x31   : > { %722 = vrot.lane.b32.xlu0 %v2293_v6, %s2216_s13  ;;  %v1320_v62 = vrot.slane %v1318_v53, 4  ;;  %v1323_v63 = vrot.slane %v1321_v54, 5  ;;  %v1327_v0 = vshll.u32 %v1932_v58, 16  ;;  %v1332_v12 = vshrl.u32 %v1933_v55, 16 }
  0x32   : > { %1137 = vrot.lane.b32.xlu1 %v2380_v47, %s2215_s12  ;;  %v1297_v56 = vrot.slane %v1296_v45, 4  ;;  %v1335_v13 = vshll.u32 %v1933_v55, 16  ;;  %v1315_v15 = vrot.slane %v1313_v60, 5  ;;  %v1341_v22 = vshll.u32 %v1934_v1, 16  ;;  %v1875_v55 = vld [vmem:[%s2632_s1 + $0x4] sm:$0x3] }
  0x33   : > { %v1324_v16 = vor.u32 %v1323_v63, %v1320_v62  ;;  %v1329_v17 = vrot.slane %v1327_v0, 5  ;;  %v1334_v19 = vrot.slane %v1332_v12, 4  ;;  %v1346_v24 = vshrl.u32 %v1935_v10, 16  ;;  %v1916_v63 = vld [vmem:[%s2632_s1 + $0xe] sm:$0x3] }
  0x34   : > { %v1337_v21 = vrot.slane %v1335_v13, 5  ;;  %v1349_v25 = vshll.u32 %v1935_v10, 16  ;;  %v1355_v26 = vshll.u32 %v1936_v11, 16  ;;  %v1343_v29 = vrot.slane %v1341_v22, 5  ;;  %v1884_v0 = vld [vmem:[%s2632_s1 + $0x6] sm:$0x3] }
  0x35   : > { %1139 = vrot.lane.b32.xlu0 %v2385_v48, %s2215_s12  ;;  %v1325_v23 = vrot.slane %v1324_v16, 4  ;;  %v1348_v31 = vrot.slane %v1346_v24, 4  ;;  %v1058_v60 = vsel %vm338_vm0, %v1907_v35, 0  ;;  %v645_v62 = vsel %vm338_vm0, %v1875_v55, 0 }
  0x36   : > { %724 = vrot.lane.b32.xlu1 %v2296_v7, %s2216_s13  ;;  %v1338_v28 = vor.u32 %v1337_v21, %v1334_v19  ;;  %v1351_v32 = vrot.slane %v1349_v25, 5  ;;  %v1357_v37 = vrot.slane %v1355_v26, 5 }
  0x37   : > { %v1330_v30 = vsel %vm2327_vm3, %v1325_v23, %v1329_v17 }
  0x38   : > { %v1352_v36 = vor.u32 %v1351_v32, %v1348_v31 }
  0x39   : > { %726 = vrot.lane.b32.xlu0 %v2303_v8, %s2216_s13 }
  0x3a   : > { %1141 = vrot.lane.b32.xlu1 %v2394_v49, %s2215_s12  ;;  %v1353_v40 = vrot.slane %v1352_v36, 4 }
  0x3c   : > { %v1358_v41 = vsel %vm2327_vm3, %v1353_v40, %v1357_v37 }
  0x3d   : > { %1552 = vrot.lane.b32.xlu0 %v2202_v50, %s2214_s11  ;;  %v1307_v50 = vshll.u32 %v1929_v34, 16  ;;  %v1339_v34 = vrot.slane %v1338_v28, 4 }
  0x3e   : > { %728 = vrot.lane.b32.xlu1 %v2306_v9, %s2216_s13 }
  0x41   : > { %1556 = vrot.lane.b32.xlu0 %v2204_v51, %s2214_s11  ;;  %v1301_v51 = vrot.slane %v1299_v38, 5  ;;  %v1344_v38 = vsel %vm2327_vm3, %v1339_v34, %v1343_v29 }
  0x42   : > { %1554 = vrot.lane.b32.xlu1 %v2203_v59, %s2214_s11  ;;  %v1309_v59 = vrot.slane %v1307_v50, 5 }
  0x43   : > { %v1302_v2 = vsel %vm2327_vm3, %v1297_v56, %v1301_v51  ;;  %v939_v51 = vsel %vm338_vm0, %v2273_v3, 0 }
  0x44   : > { %v1310_v4 = vor.u32 %v1309_v59, %v1306_v52  ;;  %v420_v52 = vsel %vm338_vm0, %v2280_v5, 0 }
  0x46   : > { %1558 = vrot.lane.b32.xlu1 %v2205_v14, %s2214_s11  ;;  %v2436_v14 = vcombine.low %v1288_v44, %v1302_v2  ;;  %v1311_v18 = vrot.slane %v1310_v4, 4  ;;  %v2448_v44 = vcombine.low %v1344_v38, %v1358_v41  ;;  %v1156_v2 = vsel %vm338_vm0, %v1916_v63, 0  ;;  %s1858_s11 = sshll.u32 %s2641_s22, 1 }
  0x47   : > { %s284_s14 = scalar_lea.vmem %s2637_s6, %s1858_s11  ;;  %s275_s17 = scalar_lea.vmem %s2635_s4, %s1858_s11 }
  0x48   : > { %v1316_v27 = vsel %vm2327_vm3, %v1311_v18, %v1315_v15 }
  0x49   : > { %v2442_v33 = vcombine.low %v1316_v27, %v1330_v30 }
  0x84   : > { %v821_v45 = vpop.permute.xlu0 %820  ;;  %v318_v50 = vpop.permute.xlu1 %317 }
  0x85   : > { %2050 = vmatprep.mubr.msk.bf16.mxu0 %vm325_vm4, %v821_v45  ;;  %2010 = vmatprep.mubr.msk.bf16.mxu1 %vm325_vm4, %v318_v50 }
  0x88   : > { %v823_v53 = vpop.permute.xlu0 %822  ;;  %v320_v54 = vpop.permute.xlu1 %319 }
  0x89   : > { %2051 = vmatmul.mubr.msk.bf16.vlgmr.msra.gmra.mrb[0].mxu0 %vm325_vm4, %v823_v53  ;;  %2011 = vmatmul.mubr.msk.bf16.vlgmr.msra.gmra.mrb[0].mxu1 %vm325_vm4, %v320_v54 }
  0x8a   : > { %2059 = vmatpush3.bf16.msra.mxu0 %v939_v51  ;;  %2019 = vmatpush3.bf16.msra.mxu1 %v420_v52 }
  0x8b   : > { %2178 = vmatprep.subr.msk.bf16.mxu0 %vm338_vm0, %v1907_v35  ;;  %2174 = vmatprep.subr.msk.bf16.mxu1 %vm338_vm0, %v1875_v55 }
  0x8c   : > { %v825_v3 = vpop.permute.xlu0 %824  ;;  %v827_v5 = vpop.permute.xlu1 %826 }
  0x8d   : > { %2054 = vmatprep.mubr.msk.bf16.mxu0 %vm325_vm4, %v825_v3 }
  0x90   : > { %v322_v56 = vpop.permute.xlu0 %321  ;;  %v324_v57 = vpop.permute.xlu1 %323 }
  0x91   : > { %2014 = vmatprep.mubr.msk.bf16.mxu1 %vm325_vm4, %v322_v56  ;;  %2055 = vmatmul.mubr.msk.bf16.gmra.mrb[4].mxu0 %vm325_vm4, %v827_v5 }
  0x92   : > { %2015 = vmatmul.mubr.msk.bf16.gmra.mrb[4].mxu1 %vm325_vm4, %v324_v57 }
  0x93   : > { %2020 = vmatprep.mubr.msk.bf16.mxu1 %vm325_vm4, %v2293_v6 }
  0x94   : > { %v919_v58 = vpop.permute.xlu0 %918 }
  0x95   : > { %2060 = vmatprep.mubr.msk.bf16.mxu0 %vm325_vm4, %v919_v58  ;;  %v921_v59 = vpop.permute.xlu1 %920 }
  0x99   : > { %2061 = vmatmul.mubr.msk.bf16.vlgmr.msra.gmra.mrb[0].mxu0 %vm325_vm4, %v921_v59 }
  0x9a   : > { %2069 = vmatpush3.bf16.msra.mxu0 %v1058_v60  ;;  %2021 = vmatmul.mubr.msk.bf16.vlgmr.msra.gmra.mrb[0].mxu1 %vm325_vm4, %v2296_v7  ;;  %v743_v7 = vsel %vm338_vm0, %v1884_v0, 0 }
  0x9b   : > { %2029 = vmatpush3.bf16.msra.mxu1 %v645_v62  ;;  %2024 = vmatprep.mubr.msk.bf16.mxu1 %vm325_vm4, %v2303_v8  ;;  %v923_v6 = vpop.permute.xlu0 %922 }
  0x9c   : > { %2179 = vmatprep.subr.msk.bf16.mxu0 %vm338_vm0, %v1916_v63  ;;  %2175 = vmatprep.subr.msk.bf16.mxu1 %vm338_vm0, %v1884_v0 }
  0x9d   : > { %2064 = vmatprep.mubr.msk.bf16.mxu0 %vm325_vm4, %v923_v6 }
  0x9f   : > { %v1136_v8 = vpop.permute.xlu0 %1135 }
  0xa0   : > { %v925_v1 = vpop.permute.xlu1 %924 }
  0xa1   : > { %2065 = vmatmul.mubr.msk.bf16.gmra.mrb[4].mxu0 %vm325_vm4, %v925_v1 }
  0xa2   : > { %2025 = vmatmul.mubr.msk.bf16.gmra.mrb[4].mxu1 %vm325_vm4, %v2306_v9  ;;  %2070 = vmatprep.mubr.msk.bf16.mxu0 %vm325_vm4, %v2365_v42  ;;  %v1937_v9 = vld [vmem:[%s2632_s1 + $0x10] sm:$0x3] }
  0xa3   : > { %2030 = vmatprep.mubr.msk.bf16.mxu1 %vm325_vm4, %v2344_v61  ;;  %v1531_v61 = vld [vmem:[%s2633_s2] sm:$0x3]  ;;  %v723_v42 = vpop.permute.xlu0 %722  ;;  %v1386_v4 = vsel %vm338_vm0, %v1937_v9, 0 }
  0xa9   : > { %2071 = vmatmul.mubr.msk.bf16.vlgmr.msra.gmra.mrb[0].mxu0 %vm325_vm4, %v2380_v47 }
  0xaa   : > { %2031 = vmatmul.mubr.msk.bf16.vlgmr.msra.gmra.mrb[0].mxu1 %vm325_vm4, %v2354_v20  ;;  %2079 = vmatpush3.bf16.msra.mxu0 %v1156_v2  ;;  %v1138_v20 = vpop.permute.xlu1 %1137 }
  0xab   : > { %2039 = vmatpush3.bf16.msra.mxu1 %v743_v7  ;;  %2074 = vmatprep.mubr.msk.bf16.mxu0 %vm325_vm4, %v2385_v48  ;;  %v1140_v48 = vpop.permute.xlu0 %1139 }
  0xac   : > { %2034 = vmatprep.mubr.msk.bf16.mxu1 %vm325_vm4, %v2362_v39  ;;  %2180 = vmatprep.subr.msk.bf16.mxu0 %vm338_vm0, %v1937_v9  ;;  %v1573_v39 = vsel %vm338_vm0, %v1531_v61, 0 }
  0xad   : > { %2181 = vmatprep.subr.msk.bf16.mxu1 %vm338_vm0, %v1531_v61 }
  0xae   : > { %v725_v47 = vpop.permute.xlu1 %724 }
  0xaf   : > { %v727_v11 = vpop.permute.xlu0 %726 }
  0xb1   : > { %2075 = vmatmul.mubr.msk.bf16.gmra.mrb[4].mxu0 %vm325_vm4, %v2394_v49 }
  0xb2   : > { %2035 = vmatmul.mubr.msk.bf16.gmra.mrb[4].mxu1 %vm325_vm4, %v2373_v46  ;;  %2080 = vmatprep.mubr.msk.bf16.mxu0 %vm325_vm4, %v1136_v8  ;;  %v1142_v10 = vpop.permute.xlu1 %1141 }
  0xb3   : > { %2040 = vmatprep.mubr.msk.bf16.mxu1 %vm325_vm4, %v723_v42  ;;  %v1553_v49 = vpop.permute.xlu0 %1552 }
  0xb6   : > { %v729_v46 = vpop.permute.xlu1 %728 }
  0xb7   : > { %v1557_v13 = vpop.permute.xlu0 %1556 }
  0xb9   : > { %2081 = vmatmul.mubr.msk.bf16.vlgmr.msra.gmra.mrb[0].mxu0 %vm325_vm4, %v1138_v20 }
  0xba   : > { %2041 = vmatmul.mubr.msk.bf16.vlgmr.msra.gmra.mrb[0].mxu1 %vm325_vm4, %v725_v47  ;;  %2089 = vmatpush3.bf16.msra.mxu0 %v1386_v4  ;;  %v1555_v12 = vpop.permute.xlu1 %1554 }
  0xbb   : > { %2099 = vmatpush3.bf16.msra.mxu1 %v1573_v39  ;;  %2084 = vmatprep.mubr.msk.bf16.mxu0 %vm325_vm4, %v1140_v48 }
  0xbc   : > { %2044 = vmatprep.mubr.msk.bf16.mxu1 %vm325_vm4, %v727_v11 }
  0xbe   : > { %v1559_v15 = vpop.permute.xlu1 %1558 }
  0xc1   : > { %2085 = vmatmul.mubr.msk.bf16.gmra.mrb[4].mxu0 %vm325_vm4, %v1142_v10 }
  0xc2   : > { %2045 = vmatmul.mubr.msk.bf16.gmra.mrb[4].mxu1 %vm325_vm4, %v729_v46  ;;  %2090 = vmatprep.mubr.msk.bf16.mxu0 %vm325_vm4, %v2424_v43 }
  0xc3   : > { %2100 = vmatprep.mubr.msk.bf16.mxu1 %vm325_vm4, %v1553_v49 }
  0xc9   : > { %2091 = vmatmul.mubr.msk.bf16.vlgmr.msra.gmra.mrb[0].mxu0 %vm325_vm4, %v2436_v14 }
  0xca   : > { %2101 = vmatmul.mubr.msk.bf16.vlgmr.msra.gmra.mrb[8].mxu1 %vm325_vm4, %v1555_v12  ;;  %2094 = vmatprep.mubr.msk.bf16.mxu0 %vm325_vm4, %v2442_v33 }
  0xcb   : > { %2104 = vmatprep.mubr.msk.bf16.mxu1 %vm325_vm4, %v1557_v13 }
  0xd1   : > { %2095 = vmatmul.mubr.msk.bf16.gmra.mrb[4].mxu0 %vm325_vm4, %v2448_v44 }
  0xd2   : > { %2105 = vmatmul.mubr.msk.bf16.gmra.mrb[12].mxu1 %vm325_vm4, %v1559_v15 }
 0x18d   : > { %v2042_v43 = vpop.f32.mrb[0].mxu1 }
 0x18e   : > { %v779_v16 = vpop.f32.mrb[1].mxu1 }
 0x18f   : > { %v2043_v17 = vpop.f32.mrb[2].mxu1 }
 0x190   : > { %v782_v18 = vpop.f32.mrb[3].mxu1 }
 0x195   : > { %v2046_v19 = vpop.f32.mrb[4].mxu1 }
 0x196   : > { %v795_v21 = vpop.f32.mrb[5].mxu1 }
 0x197   : > { %v2540_v22 = vpop.f32.mrb[6].mxu1 }
 0x198   : > { %v2542_v14 = vpop.f32.mrb[7].mxu1 }
 0x19c   : > { %v2092_v24 = vpop.f32.mrb[0].mxu0 }
 0x19d   : > { %v2102_v23 = vpop.f32.mrb[8].mxu1  ;;  %v2108_v26 = vadd.f32 %v2092_v24, %v2042_v43  ;;  %v1422_v27 = vpop.f32.mrb[1].mxu0 }
 0x19e   : > { %1642 = vst.msk [vmem:[%s2548_s7 + $0x10] sm:$0xff] %vm1461_vm5, %v2102_v23  ;;  %v1609_v25 = vpop.f32.mrb[9].mxu1  ;;  %v2109_v29 = vadd.f32 %v1422_v27, %v779_v16  ;;  %v2093_v30 = vpop.f32.mrb[2].mxu0  ;;  %v1651_v32 = vsel %vm1461_vm5, %v2102_v23, 0.0  ;;  %v1672_v33 = vmul.f32 %v2102_v23, %v2102_v23 }
 0x19f   : > { %1640 = vst.msk [vmem:[%s2548_s7] sm:$0xff] %vm1461_vm5, %v1609_v25  ;;  %v2103_v28 = vpop.f32.mrb[10].mxu1  ;;  %1464 = vst.msk [vmem:[%s2553_s10 + $0x10] sm:$0xff] %vm1461_vm5, %v2108_v26  ;;  %v2110_v34 = vadd.f32 %v2093_v30, %v2043_v17  ;;  %v1670_v36 = vmul.f32 %v1609_v25, %v1609_v25  ;;  %v1425_v37 = vpop.f32.mrb[3].mxu0  ;;  %v1495_v38 = vmul.f32 %v2108_v26, %v2108_v26  ;;  %v1648_v41 = vsel %vm1461_vm5, %v1609_v25, 0.0 }
 0x1a0   : > { %1643 = vst.msk [vmem:[%s2548_s7 + $0x18] sm:$0xff] %vm1461_vm5, %v2103_v28  ;;  %v1612_v31 = vpop.f32.mrb[11].mxu1  ;;  %1462 = vst.msk [vmem:[%s2553_s10] sm:$0xff] %vm1461_vm5, %v2109_v29  ;;  %v1493_v40 = vmul.f32 %v2109_v29, %v2109_v29  ;;  %v2111_v44 = vadd.f32 %v1425_v37, %v782_v18  ;;  %v1473_v45 = vsel %vm1461_vm5, %v2108_v26, 0.0  ;;  %v1653_v50 = vsel %vm1461_vm5, %v2103_v28, 0.0 }
 0x1a1   : > { %1641 = vst.msk [vmem:[%s2548_s7 + $0x8] sm:$0xff] %vm1461_vm5, %v1612_v31  ;;  %1465 = vst.msk [vmem:[%s2553_s10 + $0x18] sm:$0xff] %vm1461_vm5, %v2110_v34  ;;  %v1673_v51 = vmul.f32 %v2103_v28, %v2103_v28  ;;  %v1649_v52 = vsel %vm1461_vm5, %v1612_v31, 0.0  ;;  %v1470_v53 = vsel %vm1461_vm5, %v2109_v29, 0.0  ;;  %v1496_v3 = vmul.f32 %v2110_v34, %v2110_v34 }
 0x1a2   : > { %1463 = vst.msk [vmem:[%s2553_s10 + $0x8] sm:$0xff] %vm1461_vm5, %v2111_v44  ;;  %v1471_v54 = vsel %vm1461_vm5, %v2111_v44, 0.0  ;;  %v1494_v35 = vmul.f32 %v2111_v44, %v2111_v44  ;;  %v1650_v55 = vadd.f32 %v1649_v52, %v1648_v41  ;;  %v1678_v5 = vsel %vm1461_vm5, %v1670_v36, 0.0 }
 0x1a3   : > { %v1472_v56 = vadd.f32 %v1471_v54, %v1470_v53  ;;  %v1671_v57 = vmul.f32 %v1612_v31, %v1612_v31  ;;  %v1504_v59 = vsel %vm1461_vm5, %v1495_v38, 0.0  ;;  %v1501_v60 = vsel %vm1461_vm5, %v1493_v40, 0.0 }
 0x1a4   : > { %v1502_v62 = vsel %vm1461_vm5, %v1494_v35, 0.0  ;;  %v1652_v63 = vadd.f32 %v1651_v32, %v1650_v55  ;;  %v2096_v0 = vpop.f32.mrb[4].mxu0  ;;  %v1475_v20 = vsel %vm1461_vm5, %v2110_v34, 0.0  ;;  %v1681_v10 = vsel %vm1461_vm5, %v1672_v33, 0.0 }
 0x1a5   : > { %v2106_v58 = vpop.f32.mrb[12].mxu1  ;;  %v1474_v1 = vadd.f32 %v1473_v45, %v1472_v56  ;;  %v1503_v7 = vadd.f32 %v1502_v62, %v1501_v60  ;;  %v1679_v8 = vsel %vm1461_vm5, %v1671_v57, 0.0  ;;  %v2112_v2 = vadd.f32 %v2096_v0, %v2046_v19  ;;  %v1438_v9 = vpop.f32.mrb[5].mxu0 }
 0x1a6   : > { %1646 = vst.msk [vmem:[%s2548_s7 + $0x30] sm:$0xff] %vm1461_vm5, %v2106_v58  ;;  %v1625_v6 = vpop.f32.mrb[13].mxu1  ;;  %v1680_v42 = vadd.f32 %v1679_v8, %v1678_v5  ;;  %v2113_v47 = vadd.f32 %v1438_v9, %v795_v21  ;;  %v2097_v48 = vpop.f32.mrb[6].mxu0  ;;  %v1654_v39 = vadd.f32 %v1653_v50, %v1652_v63  ;;  %v1506_v11 = vsel %vm1461_vm5, %v1496_v3, 0.0 }
 0x1a7   : > { %1644 = vst.msk [vmem:[%s2548_s7 + $0x20] sm:$0xff] %vm1461_vm5, %v1625_v6  ;;  %v2107_v61 = vpop.f32.mrb[14].mxu1  ;;  %v1505_v46 = vadd.f32 %v1504_v59, %v1503_v7  ;;  %1468 = vst.msk [vmem:[%s2553_s10 + $0x30] sm:$0xff] %vm1461_vm5, %v2112_v2  ;;  %v1476_v49 = vadd.f32 %v1475_v20, %v1474_v1  ;;  %v1441_v12 = vpop.f32.mrb[7].mxu0  ;;  %v2114_v16 = vadd.f32 %v2097_v48, %v2540_v22  ;;  %v1655_v19 = vsel %vm1461_vm5, %v1625_v6, 0.0 }
 0x1a8   : > { %1647 = vst.msk [vmem:[%s2548_s7 + $0x38] sm:$0xff] %vm1461_vm5, %v2107_v61  ;;  %v1628_v4 = vpop.f32.mrb[15].mxu1  ;;  %v1682_v13 = vadd.f32 %v1681_v10, %v1680_v42  ;;  %1466 = vst.msk [vmem:[%s2553_s10 + $0x20] sm:$0xff] %vm1461_vm5, %v2113_v47  ;;  %v1477_v15 = vsel %vm1461_vm5, %v2113_v47, 0.0  ;;  %v1497_v43 = vmul.f32 %v2113_v47, %v2113_v47  ;;  %v1683_v21 = vsel %vm1461_vm5, %v1673_v51, 0.0 }
 0x1a9   : > { %1645 = vst.msk [vmem:[%s2548_s7 + $0x28] sm:$0xff] %vm1461_vm5, %v1628_v4  ;;  %v1478_v17 = vadd.f32 %v1477_v15, %v1476_v49  ;;  %v1507_v18 = vadd.f32 %v1506_v11, %v1505_v46  ;;  %1469 = vst.msk [vmem:[%s2553_s10 + $0x38] sm:$0xff] %vm1461_vm5, %v2114_v16  ;;  %v1656_v24 = vadd.f32 %v1655_v19, %v1654_v39  ;;  %v1659_v22 = vsel %vm1461_vm5, %v2106_v58, 0.0 }
 0x1aa   : > { %v1508_v23 = vsel %vm1461_vm5, %v1497_v43, 0.0  ;;  %v1674_v26 = vmul.f32 %v1625_v6, %v1625_v6  ;;  %v1684_v27 = vadd.f32 %v1683_v21, %v1682_v13  ;;  %v2115_v28 = vadd.f32 %v1441_v12, %v2542_v14 }
 0x1ab   : > { %v1509_v25 = vadd.f32 %v1508_v23, %v1507_v18  ;;  %v1499_v29 = vmul.f32 %v2112_v2, %v2112_v2  ;;  %v1676_v30 = vmul.f32 %v2106_v58, %v2106_v58  ;;  %v1657_v31 = vsel %vm1461_vm5, %v1628_v4, 0.0 }
 0x1ac   : > { %v1685_v32 = vsel %vm1461_vm5, %v1674_v26, 0.0  ;;  %1467 = vst.msk [vmem:[%s2553_s10 + $0x28] sm:$0xff] %vm1461_vm5, %v2115_v28  ;;  %v1479_v33 = vsel %vm1461_vm5, %v2115_v28, 0.0  ;;  %v1498_v34 = vmul.f32 %v2115_v28, %v2115_v28  ;;  %v1658_v36 = vadd.f32 %v1657_v31, %v1656_v24 }
 0x1ad   : > { %v1481_v37 = vsel %vm1461_vm5, %v2112_v2, 0.0  ;;  %v1686_v38 = vadd.f32 %v1685_v32, %v1684_v27  ;;  %v1480_v40 = vadd.f32 %v1479_v33, %v1478_v17  ;;  %v1675_v41 = vmul.f32 %v1628_v4, %v1628_v4 }
 0x1ae   : > { %v1500_v14 = vmul.f32 %v2114_v16, %v2114_v16  ;;  %v1510_v44 = vsel %vm1461_vm5, %v1498_v34, 0.0  ;;  %v1661_v45 = vsel %vm1461_vm5, %v2107_v61, 0.0  ;;  %v1660_v50 = vadd.f32 %v1659_v22, %v1658_v36 }
 0x1af   : > { %v1482_v51 = vadd.f32 %v1481_v37, %v1480_v40  ;;  %v1511_v52 = vadd.f32 %v1510_v44, %v1509_v25  ;;  %v1677_v53 = vmul.f32 %v2107_v61, %v2107_v61  ;;  %v1687_v54 = vsel %vm1461_vm5, %v1675_v41, 0.0 }
 0x1b0   : > { %v1512_v35 = vsel %vm1461_vm5, %v1499_v29, 0.0  ;;  %v1483_v55 = vsel %vm1461_vm5, %v2114_v16, 0.0  ;;  %v1662_v3 = vadd.f32 %v1661_v45, %v1660_v50  ;;  %v1688_v5 = vadd.f32 %v1687_v54, %v1686_v38 }
 0x1b1   : > { %v1689_v56 = vsel %vm1461_vm5, %v1676_v30, 0.0  ;;  %v1484_v57 = vadd.f32 %v1483_v55, %v1482_v51  ;;  %v1513_v58 = vadd.f32 %v1512_v35, %v1511_v52  ;;  %v1514_v59 = vsel %vm1461_vm5, %v1500_v14, 0.0 }
 0x1b2   : > { %v1663_v60 = vrot.slane %v1662_v3, 4  ;;  %v1690_v62 = vadd.f32 %v1689_v56, %v1688_v5  ;;  %v1691_v6 = vsel %vm1461_vm5, %v1677_v53, 0.0 }
 0x1b3   : > { %v1485_v63 = vrot.slane %v1484_v57, 4  ;;  %v1515_v0 = vadd.f32 %v1514_v59, %v1513_v58 }
 0x1b4   : > { %v1664_v1 = vadd.f32 %v1663_v60, %v1662_v3  ;;  %v1692_v7 = vadd.f32 %v1691_v6, %v1690_v62 }
 0x1b5   : > { %v1486_v8 = vadd.f32 %v1485_v63, %v1484_v57  ;;  %v1516_v2 = vrot.slane %v1515_v0, 4 }
 0x1b6   : > { %v1665_v9 = vrot.slane %v1664_v1, 2  ;;  %v1693_v61 = vrot.slane %v1692_v7, 4 }
 0x1b7   : > { %v1487_v20 = vrot.slane %v1486_v8, 2  ;;  %v1517_v42 = vadd.f32 %v1516_v2, %v1515_v0 }
 0x1b8   : > { %v1666_v47 = vadd.f32 %v1665_v9, %v1664_v1  ;;  %v1694_v48 = vadd.f32 %v1693_v61, %v1692_v7 }
 0x1b9   : > { %v1488_v39 = vadd.f32 %v1487_v20, %v1486_v8  ;;  %v1518_v4 = vrot.slane %v1517_v42, 2 }
 0x1ba   : > { %v1667_v10 = vrot.slane %v1666_v47, 1  ;;  %v1695_v11 = vrot.slane %v1694_v48, 2 }
 0x1bb   : > { %v1489_v46 = vrot.slane %v1488_v39, 1  ;;  %v1519_v49 = vadd.f32 %v1518_v4, %v1517_v42 }
 0x1bc   : > { %v1668_v12 = vadd.f32 %v1667_v10, %v1666_v47  ;;  %v1696_v13 = vadd.f32 %v1695_v11, %v1694_v48 }
 0x1bd   : > { %v1490_v15 = vadd.f32 %v1489_v46, %v1488_v39  ;;  %v1520_v43 = vrot.slane %v1519_v49, 1 }
 0x1be   : > { %1669 = vst.msk [vmem:[%s284_s14] sm:$0x1] %vm1491_vm6, %v1668_v12  ;;  %v1697_v16 = vrot.slane %v1696_v13, 1 }
 0x1bf   : > { %1492 = vst.msk [vmem:[%s275_s17] sm:$0x1] %vm1491_vm6, %v1490_v15  ;;  %v1521_v17 = vadd.f32 %v1520_v43, %v1519_v49 }
 0x1c0   : > { %v1698_v18 = vadd.f32 %v1697_v16, %v1696_v13 }
 0x1c1   : > { %1522 = vst.msk [vmem:[%s275_s17 + $0x1] sm:$0x1] %vm1491_vm6, %v1521_v17 }
 0x1c2   : > { %1699 = vst.msk [vmem:[%s284_s14 + $0x1] sm:$0x1] %vm1491_vm6, %v1698_v18 }
 0x1c3 PF: > { %s17_s21 = sadd.s32 1, %s2212_s21  }
 0x1c4   : > { %p14_p4 = scmp.ge.s32.totalorder %s17_s21, 4  }
 0x1c6   :  { %16 = sbr.rel (!%p14_p4) target bundleno = 1 (0x1), region = 107 }

// kernel: _lambda_.4
= control target key start
LH: loop header
LB: loop body
LE: loop exit
PB: predicated region body
PF: predicated region fallthrough
CT: control target
= control target key end

     0   :  { %s2527_s18 = smov 0   ;;  %s3127_s0 = inlined_call_operand.vmem [shape: f32[2,8,8,8], index: 0, kind: input, shape index: {}]   ;;  %s3128_s1 = inlined_call_operand.vmem [shape: f32[1,8], index: 1, kind: input, shape index: {}]   ;;  %s3129_s2 = inlined_call_operand.vmem [shape: f32[1,8], index: 2, kind: input, shape index: {}]   ;;  %s3130_s3 = inlined_call_operand.vmem [shape: bf16[9,8,8], index: 3, kind: input, shape index: {}]   ;;  %s3131_s4 = inlined_call_operand.vmem [shape: f32[2,64,8], index: 4, kind: output, shape index: {0}]   ;;  %s3132_s5 = inlined_call_operand.vmem [shape: f32[2,2,8], index: 5, kind: output, shape index: {1}]  }
   0x1 LB: > { %s2120_s19 = sadd.s32 4294967295, %s2494_s18   ;;  %p2124_p0 = scmp.ge.s32.totalorder %s2494_s18, 1  ;;  %s2494_s18 = sphi %s2527_s18, %s16_s18  }
   0x2   : > { %p190_p1 = scmp.lt.s32.totalorder %s2494_s18, 3 }
   0x4   : > { %p191_p2 = pnand %p2124_p0, %p190_p1 }
   0x5   : > { %v2140_v0 = vld [vmem:[%s3130_s3 + $0x4] sm:$0xf] (!%p191_p2)  ;;  %vm631_vm0 = vcmask (!%p191_p2), 1043456   ;;  %v2183_v1 = vld [vmem:[%s3130_s3 + $0x10] sm:$0xf] (!%p191_p2)  ;;  %p222_p3 = scmp.lt.s32.totalorder (!%p191_p2), %s2120_s19, 1 }
   0x6   : > { %194 = sbr.rel (%p191_p2) target bundleno = 386 (0x182), region = 36  ;;  %2457 = vmatprep.subr.msk.bf16.mxu1 (!%p191_p2), %vm631_vm0, %v2140_v0  ;;  %2461 = vmatprep.subr.msk.bf16.mxu0 (!%p191_p2), %vm631_vm0, %v2183_v1  ;;  %v633_v2 = vsel (!%p191_p2), %vm631_vm0, %v2140_v0, 0  ;;  %v2545_v3 = vsel (!%p191_p2), %vm631_vm0, %v2183_v1, 0  ;;  %vm237_vm1 = vcmask (!%p191_p2), 60416   ;;  %v2496_v4 = vmov (!%p191_p2), 0  }
   0x7   : > { %2302 = vmatpush3.bf16.msra.mxu1 (!%p191_p2), %v633_v2  ;;  %2342 = vmatpush3.bf16.msra.mxu0 (!%p191_p2), %v2545_v3  ;;  %238 = vst.msk [vmem:[#allocation2] sm:$0xf] (!%p191_p2), %vm237_vm1, %v2496_v4  ;;  %vm239_vm2 = vcmask (!%p191_p2), 57344   ;;  %241 = vst.msk [vmem:[#allocation2 + $0x8] sm:$0xf] (!%p191_p2), %vm237_vm1, %v2496_v4  ;;  %vm618_vm10 = vcmask (!%p191_p2), 64512  }
   0x8   : > { %243 = vst.msk [vmem:[#allocation2 + $0x10] sm:$0xf] (!%p191_p2), %vm237_vm1, %v2496_v4  ;;  %245 = vst.msk [vmem:[#allocation2 + $0x18] sm:$0xf] (!%p191_p2), %vm237_vm1, %v2496_v4  ;;  %v2565_v5 = vld [vmem:[%s3128_s1] ss:$0 sm:$0xff] (!%p191_p2) }
   0x9   : > { %247 = vst.msk [vmem:[#allocation2 + $0x20] sm:$0xf] (!%p191_p2), %vm237_vm1, %v2496_v4  ;;  %249 = vst.msk [vmem:[#allocation2 + $0x28] sm:$0xf] (!%p191_p2), %vm237_vm1, %v2496_v4  ;;  %v2579_v6 = vld [vmem:[%s3130_s3] sm:$0xf] (!%p191_p2) }
   0xa   : > { %251 = vst.msk [vmem:[#allocation2 + $0x30] sm:$0xf] (!%p191_p2), %vm237_vm1, %v2496_v4  ;;  %253 = vst.msk [vmem:[#allocation2 + $0x38] sm:$0xf] (!%p191_p2), %vm237_vm1, %v2496_v4  ;;  %v2584_v7 = vld [vmem:[%s3130_s3 + $0x14] sm:$0xf] (!%p191_p2)  ;;  %2458 = vmatprep.subr.msk.bf16.mxu1 (!%p191_p2), %vm631_vm0, %v2579_v6 }
   0xb   : > { %255 = vst.msk [vmem:[#allocation2 + $0x40] sm:$0xf] (!%p191_p2), %vm237_vm1, %v2496_v4  ;;  %257 = vst.msk [vmem:[#allocation2 + $0x48] sm:$0xf] (!%p191_p2), %vm237_vm1, %v2496_v4  ;;  %v2596_v8 = vld [vmem:[%s3129_s2] ss:$0 sm:$0xff] (!%p191_p2)  ;;  %2463 = vmatprep.subr.msk.bf16.mxu0 (!%p191_p2), %vm631_vm0, %v2584_v7 }
   0xc   : > { %240 = vst.msk [vmem:[#allocation2 + $0x4] sm:$0x1] (!%p191_p2), %vm239_vm2, %v2496_v4  ;;  %242 = vst.msk [vmem:[#allocation2 + $0xc] sm:$0x1] (!%p191_p2), %vm239_vm2, %v2496_v4  ;;  %vm419_vm3 = vsmask.f32 (!%p191_p2), 7938 }
   0xd   : > { %s3142_s19 = smov (!%p222_p3, %s2120_s19), 1  ;;  %244 = vst.msk [vmem:[#allocation2 + $0x14] sm:$0x1] %vm239_vm2, %v2496_v4  ;;  %246 = vst.msk [vmem:[#allocation2 + $0x1c] sm:$0x1] %vm239_vm2, %v2496_v4  ;;  %vm824_vm11 = vcmask 1042432  }
   0xe   : > { %248 = vst.msk [vmem:[#allocation2 + $0x24] sm:$0x1] %vm239_vm2, %v2496_v4  ;;  %250 = vst.msk [vmem:[#allocation2 + $0x2c] sm:$0x1] %vm239_vm2, %v2496_v4  ;;  %s2246_s26 = sshll.u32 %s3142_s19, 6  ;;  %vm825_vm12 = vcmask 1046532  }
   0xf   : > { %252 = vst.msk [vmem:[#allocation2 + $0x34] sm:$0x1] %vm239_vm2, %v2496_v4  ;;  %254 = vst.msk [vmem:[#allocation2 + $0x3c] sm:$0x1] %vm239_vm2, %v2496_v4  ;;  %s2591_s8 = scalar_lea.vmem %s3127_s0, %s2246_s26  ;;  %v2613_v20 = vld [vmem:[#allocation2] sm:$0xf]  ;;  %s3084_s28 = scalar_lea.vmem %s3131_s4, %s2246_s26 }
  0x10   : > { %256 = vst.msk [vmem:[#allocation2 + $0x44] sm:$0x1] %vm239_vm2, %v2496_v4  ;;  %258 = vst.msk [vmem:[#allocation2 + $0x4c] sm:$0x1] %vm239_vm2, %v2496_v4  ;;  %v259_v9 = vld [vmem:[%s2591_s8] sm:$0xff]  ;;  %v260_v10 = vld [vmem:[%s2591_s8 + $0x8] sm:$0xff] }
  0x11   : > { %v261_v11 = vld [vmem:[%s2591_s8 + $0x10] sm:$0xff]  ;;  %v274_v12 = vmul.f32 %v2565_v5, %v259_v9  ;;  %v275_v13 = vmul.f32 %v2565_v5, %v260_v10  ;;  %v262_v15 = vld [vmem:[%s2591_s8 + $0x18] sm:$0xff]  ;;  %v263_v16 = vld [vmem:[%s2591_s8 + $0x20] sm:$0xff]  ;;  %v493_v23 = vshrl.u32 %v2613_v20, 16  ;;  %v496_v24 = vshll.u32 %v2613_v20, 16  ;;  %s2129_s26 = sshll.u32 %s3142_s19, 1 }
  0x12   : > { %v276_v14 = vmul.f32 %v2565_v5, %v261_v11  ;;  %v277_v17 = vmul.f32 %v2565_v5, %v262_v15  ;;  %v278_v18 = vmul.f32 %v2565_v5, %v263_v16  ;;  %v264_v27 = vld [vmem:[%s2591_s8 + $0x28] sm:$0xff]  ;;  %v265_v28 = vld [vmem:[%s2591_s8 + $0x30] sm:$0xff]  ;;  %vm425_vm4 = vsmask.f32 256  ;;  %vm2636_vm5 = vmand %vm237_vm1, %vm419_vm3  ;;  %s235_s6 = scalar_lea.vmem %s3132_s5, %s2129_s26 }
  0x13   : > { %v289_v19 = vadd.f32 %v2596_v8, %v274_v12  ;;  %v290_v21 = vadd.f32 %v2596_v8, %v275_v13  ;;  %v2623_v30 = vld [vmem:[#allocation2 + $0x4] sm:$0x1]  ;;  %v2625_v32 = vrot.slane %v493_v23, 4  ;;  %v2627_v33 = vrot.slane %v496_v24, 5  ;;  %v421_v48 = vld [vmem:[#allocation2 + $0x8] sm:$0xf]  ;;  %vm2643_vm6 = vmand %vm239_vm2, %vm425_vm4 }
  0x14   : > { %v291_v22 = vadd.f32 %v2596_v8, %v276_v14  ;;  %v292_v25 = vadd.f32 %v2596_v8, %v277_v17  ;;  %v293_v26 = vadd.f32 %v2596_v8, %v278_v18  ;;  %v279_v38 = vmul.f32 %v2565_v5, %v264_v27  ;;  %v427_v49 = vld [vmem:[#allocation2 + $0xc] sm:$0x1]  ;;  %v430_v51 = vld [vmem:[#allocation2 + $0x10] sm:$0xf]  ;;  %v433_v58 = vld [vmem:[#allocation2 + $0x14] sm:$0x1] }
  0x15   : > { %v297_v29 = vmax.f32 %v289_v19, 0.0  ;;  %v298_v31 = vmax.f32 %v290_v21, 0.0  ;;  %v280_v39 = vmul.f32 %v2565_v5, %v265_v28  ;;  %v502_v40 = vshll.u32 %v2623_v30, 16  ;;  %v436_v63 = vld [vmem:[#allocation2 + $0x18] sm:$0xf]  ;;  %vm2773_vm13 = vmor %vm824_vm11, %vm825_vm12 }
  0x16   : > { %v299_v34 = vmax.f32 %v291_v22, 0.0  ;;  %v300_v35 = vmax.f32 %v292_v25, 0.0  ;;  %v301_v43 = vmax.f32 %v293_v26, 0.0  ;;  %v499_v50 = vor.u32 %v2627_v33, %v2625_v32  ;;  %v439_v0 = vld [vmem:[#allocation2 + $0x1c] sm:$0x1] }
  0x17   : > { %v2248_v36 = vpack.c.bf16 %v297_v29, %v297_v29  ;;  %v2249_v37 = vpack.c.bf16 %v298_v31, %v298_v31  ;;  %v294_v60 = vadd.f32 %v2596_v8, %v279_v38  ;;  %v295_v4 = vadd.f32 %v2596_v8, %v280_v39  ;;  %v442_v13 = vld [vmem:[#allocation2 + $0x20] sm:$0xf]  ;;  %v445_v14 = vld [vmem:[#allocation2 + $0x24] sm:$0x1]  ;;  %v266_v24 = vld [vmem:[%s2591_s8 + $0x38] sm:$0xff] }
  0x18   : > { %v2250_v41 = vpack.c.bf16 %v299_v34, %v299_v34  ;;  %v2251_v42 = vpack.c.bf16 %v300_v35, %v300_v35  ;;  %v2252_v2 = vpack.c.bf16 %v301_v43, %v301_v43  ;;  %vm489_vm7 = vsmask.f32 3328  ;;  %v448_v39 = vld [vmem:[#allocation2 + $0x28] sm:$0xf] }
  0x19   : > { %v338_v44 = vshrl.u32 %v2248_v36, 16  ;;  %v341_v45 = vshll.u32 %v2248_v36, 16  ;;  %v346_v46 = vshrl.u32 %v2249_v37, 16  ;;  %v349_v47 = vshll.u32 %v2249_v37, 16 }
  0x1a   : > { %v354_v52 = vshrl.u32 %v2250_v41, 16  ;;  %v357_v53 = vshll.u32 %v2250_v41, 16  ;;  %v362_v54 = vshrl.u32 %v2251_v42, 16  ;;  %v365_v59 = vshll.u32 %v2251_v42, 16  ;;  %v451_v41 = vld [vmem:[#allocation2 + $0x2c] sm:$0x1] }
  0x1b   : > { %v340_v55 = vrot.slane %v338_v44, 7  ;;  %v348_v57 = vrot.slane %v346_v46, 7  ;;  %v370_v29 = vshrl.u32 %v2252_v2, 16  ;;  %v373_v31 = vshll.u32 %v2252_v2, 16 }
  0x1c   : > { %v356_v62 = vrot.slane %v354_v52, 7  ;;  %v364_v1 = vrot.slane %v362_v54, 7  ;;  %v302_v32 = vmax.f32 %v294_v60, 0.0  ;;  %v303_v33 = vmax.f32 %v295_v4, 0.0 }
  0x1d   : > { %v343_v9 = vor.u32 %v341_v45, %v340_v55  ;;  %v344_v10 = vrot.slane %v340_v55, 4  ;;  %v351_v11 = vor.u32 %v349_v47, %v348_v57  ;;  %v352_v12 = vrot.slane %v348_v57, 4 }
  0x1e   : > { %v359_v15 = vor.u32 %v357_v53, %v356_v62  ;;  %v360_v16 = vrot.slane %v356_v62, 4  ;;  %v367_v17 = vor.u32 %v365_v59, %v364_v1  ;;  %v368_v18 = vrot.slane %v364_v1, 4 }
  0x1f   : > { %v422_v19 = vsel %vm2636_vm5, %v343_v9, %v421_v48  ;;  %v428_v21 = vsel %vm2643_vm6, %v344_v10, %v427_v49  ;;  %v431_v22 = vsel %vm2636_vm5, %v351_v11, %v430_v51  ;;  %v434_v23 = vsel %vm2643_vm6, %v352_v12, %v433_v58 }
  0x20   : > { %423 = vst [vmem:[#allocation2 + $0x8] sm:$0xf] %v422_v19  ;;  %429 = vst [vmem:[#allocation2 + $0xc] sm:$0x1] %v428_v21  ;;  %v437_v25 = vsel %vm2636_vm5, %v359_v15, %v436_v63  ;;  %v440_v26 = vsel %vm2643_vm6, %v360_v16, %v439_v0  ;;  %v443_v27 = vsel %vm2636_vm5, %v367_v17, %v442_v13  ;;  %vm490_vm8 = vsmask.f32 7440 }
  0x21   : > { %432 = vst [vmem:[#allocation2 + $0x10] sm:$0xf] %v431_v22  ;;  %435 = vst [vmem:[#allocation2 + $0x14] sm:$0x1] %v434_v23  ;;  %v446_v28 = vsel %vm2643_vm6, %v368_v18, %v445_v14  ;;  %v281_v34 = vmul.f32 %v2565_v5, %v266_v24  ;;  %v372_v35 = vrot.slane %v370_v29, 7  ;;  %v2666_v36 = vpack.c.bf16 %v302_v32, %v302_v32 }
  0x22   : > { %438 = vst [vmem:[#allocation2 + $0x18] sm:$0xf] %v437_v25  ;;  %441 = vst [vmem:[#allocation2 + $0x1c] sm:$0x1] %v440_v26  ;;  %v2668_v37 = vpack.c.bf16 %v303_v33, %v303_v33  ;;  %v2672_v38 = vsel %vm631_vm0, %v2579_v6, 0  ;;  %v500_v43 = vrot.slane %v499_v50, 4 }
  0x23   : > { %444 = vst [vmem:[#allocation2 + $0x20] sm:$0xf] %v443_v27  ;;  %447 = vst [vmem:[#allocation2 + $0x24] sm:$0x1] %v446_v28  ;;  %v296_v42 = vadd.f32 %v2596_v8, %v281_v34  ;;  %v504_v44 = vrot.slane %v502_v40, 5  ;;  %v375_v45 = vor.u32 %v373_v31, %v372_v35  ;;  %v376_v5 = vrot.slane %v372_v35, 4 }
  0x24   : > { %vm2677_vm9 = vmor %vm489_vm7, %vm490_vm8  ;;  %v2683_v47 = vsel %vm631_vm0, %v2584_v7, 0  ;;  %v378_v6 = vshrl.u32 %v2666_v36, 16  ;;  %v381_v48 = vshll.u32 %v2666_v36, 16  ;;  %v386_v8 = vshrl.u32 %v2668_v37, 16 }
  0x25   : > { %v449_v51 = vsel %vm2636_vm5, %v375_v45, %v448_v39  ;;  %v452_v52 = vsel %vm2643_vm6, %v376_v5, %v451_v41  ;;  %v304_v57 = vmax.f32 %v296_v42, 0.0  ;;  %v505_v58 = vsel %vm2677_vm9, %v500_v43, %v504_v44 }
  0x26   : > { %450 = vst [vmem:[#allocation2 + $0x28] sm:$0xf] %v449_v51  ;;  %453 = vst [vmem:[#allocation2 + $0x2c] sm:$0x1] %v452_v52  ;;  %v389_v4 = vshll.u32 %v2668_v37, 16 }
  0x27   : > { %v2688_v49 = vld [vmem:[#allocation2 + $0x8] sm:$0xf]  ;;  %v2690_v50 = vld [vmem:[#allocation2 + $0xc] sm:$0x1]  ;;  %v2714_v19 = vpack.c.bf16 %v304_v57, %v304_v57 }
  0x28   : > { %v1079_v40 = vld [vmem:[#allocation2 + $0x8] sm:$0xf]  ;;  %v507_v7 = vshrl.u32 %v2688_v49, 16  ;;  %v510_v53 = vshll.u32 %v2688_v49, 16  ;;  %v516_v54 = vshll.u32 %v2690_v50, 16 }
  0x29   : > { %v2699_v55 = vld [vmem:[#allocation2 + $0xc] sm:$0x1]  ;;  %v1081_v59 = vld [vmem:[#allocation2 + $0x10] sm:$0xf]  ;;  %v2703_v60 = vld [vmem:[#allocation2 + $0x14] sm:$0x1] }
  0x2a   : > { %v1096_v62 = vshrl.u32 %v1079_v40, 16  ;;  %v1099_v63 = vshll.u32 %v1079_v40, 16  ;;  %v509_v0 = vrot.slane %v507_v7, 4  ;;  %v512_v1 = vrot.slane %v510_v53, 5  ;;  %v2707_v13 = vld [vmem:[#allocation2 + $0x10] sm:$0xf] }
  0x2b   : > { %v1105_v2 = vshll.u32 %v2699_v55, 16  ;;  %v1110_v11 = vshrl.u32 %v1081_v59, 16  ;;  %v1113_v12 = vshll.u32 %v1081_v59, 16  ;;  %v518_v15 = vrot.slane %v516_v54, 5  ;;  %v2710_v17 = vld [vmem:[#allocation2 + $0x18] sm:$0xf] }
  0x2c   : > { %v1098_v9 = vrot.slane %v1096_v62, 4  ;;  %v1101_v10 = vrot.slane %v1099_v63, 5  ;;  %v513_v14 = vor.u32 %v512_v1, %v509_v0  ;;  %v1119_v16 = vshll.u32 %v2703_v60, 16  ;;  %v2712_v18 = vld [vmem:[#allocation2 + $0x14] sm:$0x1] }
  0x2d   : > { %v1107_v22 = vrot.slane %v1105_v2, 5  ;;  %v1112_v23 = vrot.slane %v1110_v11, 4  ;;  %v1115_v24 = vrot.slane %v1113_v12, 5  ;;  %v521_v27 = vshrl.u32 %v2707_v13, 16  ;;  %v2718_v32 = vld [vmem:[#allocation2 + $0x1c] sm:$0x1] }
  0x2e   : > { %v1102_v21 = vor.u32 %v1101_v10, %v1098_v9  ;;  %v514_v25 = vrot.slane %v513_v14, 4  ;;  %v1121_v26 = vrot.slane %v1119_v16, 5  ;;  %v524_v28 = vshll.u32 %v2707_v13, 16  ;;  %v1083_v43 = vld [vmem:[#allocation2 + $0x18] sm:$0xf] }
  0x2f   : > { %v1116_v31 = vor.u32 %v1115_v24, %v1112_v23  ;;  %v530_v33 = vshll.u32 %v2712_v18, 16  ;;  %v535_v34 = vshrl.u32 %v2710_v17, 16  ;;  %v523_v39 = vrot.slane %v521_v27, 4  ;;  %v2727_v51 = vld [vmem:[#allocation2 + $0x1c] sm:$0x1] }
  0x30   : > { %v1103_v29 = vrot.slane %v1102_v21, 4  ;;  %v519_v35 = vsel %vm2677_vm9, %v514_v25, %v518_v15  ;;  %v526_v41 = vrot.slane %v524_v28, 5  ;;  %v538_v42 = vshll.u32 %v2710_v17, 16  ;;  %v1085_v57 = vld [vmem:[#allocation2 + $0x20] sm:$0xf] }
  0x31   : > { %v2141_v44 = vcombine.low %v505_v58, %v519_v35  ;;  %v1117_v5 = vrot.slane %v1116_v31, 4  ;;  %v532_v40 = vrot.slane %v530_v33, 5  ;;  %v537_v7 = vrot.slane %v535_v34, 4  ;;  %v2735_v63 = vld [vmem:[#allocation2 + $0x24] sm:$0x1] }
  0x32   : > { %v1108_v45 = vsel %vm2677_vm9, %v1103_v29, %v1107_v22  ;;  %v527_v52 = vor.u32 %v526_v41, %v523_v39  ;;  %v540_v53 = vrot.slane %v538_v42, 5  ;;  %v544_v54 = vshll.u32 %v2718_v32, 16  ;;  %v2738_v16 = vld [vmem:[#allocation2 + $0x20] sm:$0xf]  ;;  %v2744_v25 = vld [vmem:[#allocation2 + $0x28] sm:$0xf] }
  0x33   : > { %2303 = vmatprep.mubr.msk.bf16.mxu1 %vm618_vm10, %v2141_v44  ;;  %v1122_v58 = vsel %vm2677_vm9, %v1117_v5, %v1121_v26  ;;  %v1335_v59 = vrot.slane %v2699_v55, 5  ;;  %v1339_v62 = vrot.slane %v2703_v60, 5  ;;  %v1124_v0 = vshrl.u32 %v1083_v43, 16  ;;  %v2747_v31 = vld [vmem:[#allocation2 + $0x24] sm:$0x1] }
  0x34   : > { %v2184_v1 = vcombine.low %v1108_v45, %v1122_v58  ;;  %v528_v2 = vrot.slane %v527_v52, 4  ;;  %v541_v9 = vor.u32 %v540_v53, %v537_v7  ;;  %v546_v10 = vrot.slane %v544_v54, 5  ;;  %v2752_v41 = vld [vmem:[#allocation2 + $0x2c] sm:$0x1]  ;;  %v2759_v5 = vld [vmem:[%s3130_s3 + $0x8] sm:$0xf] }
  0x35   : > { %v1126_v11 = vrot.slane %v1124_v0, 4  ;;  %v1127_v12 = vshll.u32 %v1083_v43, 16  ;;  %v1133_v14 = vshll.u32 %v2727_v51, 16  ;;  %v1138_v15 = vshrl.u32 %v1085_v57, 16  ;;  %v801_v56 = vld [vmem:[#allocation2 + $0x8] sm:$0xe] }
  0x36   : > { %2343 = vmatprep.mubr.msk.bf16.mxu0 %vm618_vm10, %v2184_v1  ;;  %v533_v21 = vsel %vm2677_vm9, %v528_v2, %v532_v40  ;;  %v542_v22 = vrot.slane %v541_v9, 4  ;;  %v1141_v23 = vshll.u32 %v1085_v57, 16  ;;  %v1147_v24 = vshll.u32 %v2735_v63, 16  ;;  %v1309_v1 = vld [vmem:[#allocation2 + $0x8] sm:$0xe] }
  0x37   : > { %v1129_v26 = vrot.slane %v1127_v12, 5  ;;  %v1135_v27 = vrot.slane %v1133_v14, 5  ;;  %v1140_v28 = vrot.slane %v1138_v15, 4  ;;  %v1343_v29 = vrot.slane %v2727_v51, 5  ;;  %v454_v12 = vld [vmem:[#allocation2 + $0x30] sm:$0xf] }
  0x38   : > { %v547_v33 = vsel %vm2677_vm9, %v542_v22, %v546_v10  ;;  %v1143_v34 = vrot.slane %v1141_v23, 5  ;;  %v1149_v35 = vrot.slane %v1147_v24, 5  ;;  %v1347_v39 = vrot.slane %v2735_v63, 5  ;;  %v457_v23 = vld [vmem:[#allocation2 + $0x34] sm:$0x1] }
  0x39   : > { %v2142_v42 = vcombine.low %v533_v21, %v547_v33  ;;  %v1130_v43 = vor.u32 %v1129_v26, %v1126_v11  ;;  %v549_v44 = vshrl.u32 %v2738_v16, 16  ;;  %v552_v45 = vshll.u32 %v2738_v16, 16  ;;  %v1310_v33 = vld [vmem:[#allocation2 + $0x10] sm:$0xe] }
  0x3a   : > { %v1144_v40 = vor.u32 %v1143_v34, %v1140_v28  ;;  %v558_v52 = vshll.u32 %v2747_v31, 16  ;;  %v563_v7 = vshrl.u32 %v2744_v25, 16  ;;  %v566_v53 = vshll.u32 %v2744_v25, 16  ;;  %v460_v28 = vld [vmem:[#allocation2 + $0x38] sm:$0xf] }
  0x3b   : > { %2304 = vmatmul.mubr.msk.bf16.vlgmr.msra.gmra.mrb[0].mxu1 %vm618_vm10, %v2142_v42  ;;  %v1131_v54 = vrot.slane %v1130_v43, 4  ;;  %v551_v57 = vrot.slane %v549_v44, 4  ;;  %v554_v58 = vrot.slane %v552_v45, 5  ;;  %v572_v0 = vshll.u32 %v2752_v41, 16  ;;  %v463_v45 = vld [vmem:[#allocation2 + $0x3c] sm:$0x1] }
  0x3c   : > { %2312 = vmatpush3.bf16.msra.mxu1 %v2672_v38  ;;  %v1145_v2 = vrot.slane %v1144_v40, 4  ;;  %v560_v9 = vrot.slane %v558_v52, 5  ;;  %v565_v10 = vrot.slane %v563_v7, 4  ;;  %v568_v11 = vrot.slane %v566_v53, 5  ;;  %v1311_v40 = vld [vmem:[#allocation2 + $0x18] sm:$0xe] }
  0x3d   : > { %v1136_v14 = vsel %vm2677_vm9, %v1131_v54, %v1135_v27  ;;  %v555_v15 = vor.u32 %v554_v58, %v551_v57  ;;  %v574_v21 = vrot.slane %v572_v0, 5  ;;  %v380_v22 = vrot.slane %v378_v6, 7  ;;  %2459 = vmatprep.subr.msk.bf16.mxu1 %vm631_vm0, %v2759_v5  ;;  %v2209_v53 = vld [vmem:[%s3130_s3 + $0x18] sm:$0xf]  ;;  %v1312_v54 = vld [vmem:[#allocation2 + $0x20] sm:$0xe] }
  0x3e   : > { %v1150_v38 = vsel %vm2677_vm9, %v1145_v2, %v1149_v35  ;;  %v569_v26 = vor.u32 %v568_v11, %v565_v10  ;;  %v388_v27 = vrot.slane %v386_v8, 7  ;;  %v2192_v6 = vrot.slane %v1309_v1, 9  ;;  %v1313_v0 = vld [vmem:[#allocation2 + $0x28] sm:$0xe] }
  0x3f   : > { %v2185_v34 = vcombine.low %v1136_v14, %v1150_v38  ;;  %v556_v42 = vrot.slane %v555_v15, 4  ;;  %v383_v43 = vor.u32 %v381_v48, %v380_v22  ;;  %v384_v44 = vrot.slane %v380_v22, 4 }
  0x40   : > { %v570_v52 = vrot.slane %v569_v26, 4  ;;  %v391_v7 = vor.u32 %v389_v4, %v388_v27  ;;  %v392_v35 = vrot.slane %v388_v27, 4  ;;  %v1336_v8 = vsel %vm2773_vm13, %v2192_v6, %v1335_v59 }
  0x41   : > { %2344 = vmatmul.mubr.msk.bf16.vlgmr.msra.gmra.mrb[0].mxu0 %vm618_vm10, %v2185_v34  ;;  %v561_v36 = vsel %vm2677_vm9, %v556_v42, %v560_v9  ;;  %v455_v37 = vsel %vm2636_vm5, %v383_v43, %v454_v12  ;;  %v458_v48 = vsel %vm2643_vm6, %v384_v44, %v457_v23  ;;  %v2193_v55 = vrot.slane %v1310_v33, 9  ;;  %v2813_v9 = vld [vmem:[#allocation2 + $0x2c] sm:$0x1] }
  0x42   : > { %2352 = vmatpush3.bf16.msra.mxu0 %v2683_v47  ;;  %v575_v4 = vsel %vm2677_vm9, %v570_v52, %v574_v21  ;;  %456 = vst [vmem:[#allocation2 + $0x30] sm:$0xf] %v455_v37  ;;  %459 = vst [vmem:[#allocation2 + $0x34] sm:$0x1] %v458_v48  ;;  %v461_v59 = vsel %vm2636_vm5, %v391_v7, %v460_v28  ;;  %v464_v57 = vsel %vm2643_vm6, %v392_v35, %v463_v45  ;;  %v2218_v35 = vld [vmem:[%s3130_s3 + $0x1c] sm:$0xf] }
  0x43   : > { %v2194_v58 = vrot.slane %v1311_v40, 9  ;;  %v2143_v1 = vcombine.low %v561_v36, %v575_v4  ;;  %462 = vst [vmem:[#allocation2 + $0x38] sm:$0xf] %v461_v59  ;;  %465 = vst [vmem:[#allocation2 + $0x3c] sm:$0x1] %v464_v57  ;;  %v1340_v47 = vsel %vm2773_vm13, %v2193_v55, %v1339_v62  ;;  %2464 = vmatprep.subr.msk.bf16.mxu0 %vm631_vm0, %v2209_v53  ;;  %v2195_v2 = vrot.slane %v1312_v54, 9 }
  0x44   : > { %v2201_v10 = vcombine.low %v1336_v8, %v1340_v47  ;;  %v2196_v11 = vrot.slane %v1313_v0, 9  ;;  %v394_v12 = vshrl.u32 %v2714_v19, 16  ;;  %v1351_v14 = vrot.slane %v2813_v9, 5  ;;  %v469_v36 = vld [vmem:[#allocation2 + $0x44] sm:$0x1] }
  0x45   : > { %2307 = vmatprep.mubr.msk.bf16.mxu1 %vm618_vm10, %v2143_v1  ;;  %v1344_v60 = vsel %vm2773_vm13, %v2194_v58, %v1343_v29  ;;  %v1348_v62 = vsel %vm2773_vm13, %v2195_v2, %v1347_v39  ;;  %v397_v15 = vshll.u32 %v2714_v19, 16  ;;  %v1511_v22 = vsel %vm631_vm0, %v2209_v53, 0  ;;  %v466_v29 = vld [vmem:[#allocation2 + $0x40] sm:$0xf]  ;;  %v2859_v2 = vld [vmem:[#allocation2 + $0x48] sm:$0xf] }
  0x46   : > { %2353 = vmatprep.mubr.msk.bf16.mxu0 %vm618_vm10, %v2201_v10  ;;  %v396_v21 = vrot.slane %v394_v12, 7  ;;  %v2202_v51 = vcombine.low %v1344_v60, %v1348_v62  ;;  %v1352_v19 = vsel %vm2773_vm13, %v2196_v11, %v1351_v14  ;;  %v800_v0 = vld [vmem:[#allocation2] sm:$0xe]  ;;  %v829_v10 = vrot.slane %v2623_v30, 5 }
  0x47   : > { %v2867_v60 = vsel %vm631_vm0, %v2759_v5, 0  ;;  %v2157_v14 = vrot.slane %v800_v0, 9  ;;  %v2149_v30 = vcombine.low %v2613_v20, %v2688_v49  ;;  %v2914_v0 = vld [vmem:[%s3130_s3 + $0xc] sm:$0xf] }
  0x48   : > { %v399_v33 = vor.u32 %v397_v15, %v396_v21  ;;  %v400_v55 = vrot.slane %v396_v21, 4  ;;  %v2876_v21 = vsel %vm631_vm0, %v2218_v35, 0 }
  0x49   : > { %v2829_v23 = vld [vmem:[#allocation2 + $0x30] sm:$0xf]  ;;  %v2831_v38 = vld [vmem:[#allocation2 + $0x34] sm:$0x1]  ;;  %v2885_v49 = vsel %vm2773_vm13, %v2157_v14, %v829_v10  ;;  %v1592_v10 = vld [vmem:[#allocation2 + $0x28] sm:$0xf] }
  0x4a   : > { %v2833_v26 = vld [vmem:[#allocation2 + $0x34] sm:$0x1]  ;;  %v2835_v27 = vld [vmem:[#allocation2 + $0x38] sm:$0xf]  ;;  %v2837_v63 = vld [vmem:[#allocation2 + $0x3c] sm:$0x1]  ;;  %v467_v4 = vsel %vm2636_vm5, %v399_v33, %v466_v29  ;;  %v470_v47 = vsel %vm2643_vm6, %v400_v55, %v469_v36  ;;  %v2151_v55 = vcombine.low %v2738_v16, %v2744_v25 }
  0x4b   : > { %v577_v39 = vshrl.u32 %v2829_v23, 16  ;;  %v580_v28 = vshll.u32 %v2829_v23, 16  ;;  %v586_v6 = vshll.u32 %v2831_v38, 16  ;;  %v591_v34 = vshrl.u32 %v2835_v27, 16  ;;  %v1314_v44 = vld [vmem:[#allocation2 + $0x30] sm:$0xe] }
  0x4c   : > { %v594_v42 = vshll.u32 %v2835_v27, 16  ;;  %v600_v43 = vshll.u32 %v2837_v63, 16  ;;  %v2197_v52 = vrot.slane %v1314_v44, 9  ;;  %v1355_v7 = vrot.slane %v2833_v26, 5  ;;  %468 = vst [vmem:[#allocation2 + $0x40] sm:$0xf] %v467_v4 }
  0x4d   : > { %v579_v45 = vrot.slane %v577_v39, 4  ;;  %v582_v40 = vrot.slane %v580_v28, 5  ;;  %v588_v8 = vrot.slane %v586_v6, 5  ;;  %v593_v53 = vrot.slane %v591_v34, 4  ;;  %2354 = vmatmul.mubr.msk.bf16.vlgmr.msra.gmra.mrb[0].mxu0 %vm618_vm10, %v2202_v51  ;;  %471 = vst [vmem:[#allocation2 + $0x44] sm:$0x1] %v470_v47 }
  0x4e   : > { %v596_v54 = vrot.slane %v594_v42, 5  ;;  %2362 = vmatpush3.bf16.msra.mxu0 %v1511_v22  ;;  %v1356_v48 = vsel %vm2773_vm13, %v2197_v52, %v1355_v7  ;;  %v602_v57 = vrot.slane %v600_v43, 5  ;;  %v2869_v62 = vld [vmem:[#allocation2 + $0x3c] sm:$0x1]  ;;  %v1315_v61 = vld [vmem:[#allocation2 + $0x38] sm:$0xe] }
  0x4f   : > { %v583_v37 = vor.u32 %v582_v40, %v579_v45  ;;  %v2203_v58 = vcombine.low %v1352_v19, %v1356_v48  ;;  %2465 = vmatprep.subr.msk.bf16.mxu0 %vm631_vm0, %v2218_v35  ;;  %v802_v22 = vld [vmem:[#allocation2 + $0x10] sm:$0xe]  ;;  %v1701_v51 = vshrl.u32 %v2859_v2, 16  ;;  %v833_v29 = vrot.slane %v2690_v50, 5  ;;  %v803_v28 = vld [vmem:[#allocation2 + $0x18] sm:$0xe] }
  0x50   : > { %v597_v59 = vor.u32 %v596_v54, %v593_v53  ;;  %v2158_v39 = vrot.slane %v801_v56, 9  ;;  %v2198_v19 = vrot.slane %v1315_v61, 9  ;;  %v1359_v33 = vrot.slane %v2869_v62, 5  ;;  %v1586_v6 = vld [vmem:[#allocation2 + $0x10] sm:$0xf] }
  0x51   : > { %v584_v1 = vrot.slane %v583_v37, 4  ;;  %2357 = vmatprep.mubr.msk.bf16.mxu0 %vm618_vm10, %v2203_v58  ;;  %v1588_v34 = vld [vmem:[#allocation2 + $0x18] sm:$0xf]  ;;  %v837_v42 = vrot.slane %v2712_v18, 5  ;;  %v2159_v43 = vrot.slane %v802_v22, 9  ;;  %v841_v50 = vrot.slane %v2718_v32, 5 }
  0x52   : > { %v598_v11 = vrot.slane %v597_v59, 4  ;;  %v2160_v45 = vrot.slane %v803_v28, 9  ;;  %v804_v40 = vld [vmem:[#allocation2 + $0x20] sm:$0xe]  ;;  %v2889_v52 = vrot.slane %v1701_v51, 4  ;;  %v2150_v18 = vcombine.low %v2707_v13, %v2710_v17 }
  0x53   : > { %v589_v12 = vsel %vm2677_vm9, %v584_v1, %v588_v8  ;;  %v1316_v20 = vld [vmem:[#allocation2 + $0x40] sm:$0xe]  ;;  %v2897_v35 = vsel %vm2773_vm13, %v2158_v39, %v833_v29  ;;  %v805_v8 = vld [vmem:[#allocation2 + $0x28] sm:$0xe]  ;;  %v1603_v53 = vshrl.u32 %v1586_v6, 16  ;;  %v1606_v54 = vshll.u32 %v1586_v6, 16 }
  0x54   : > { %v603_v15 = vsel %vm2677_vm9, %v598_v11, %v602_v57  ;;  %v2199_v44 = vrot.slane %v1316_v20, 9  ;;  %v2893_v7 = vld [vmem:[#allocation2 + $0x44] sm:$0x1]  ;;  %v1360_v32 = vsel %vm2773_vm13, %v2198_v19, %v1359_v33  ;;  %v1617_v37 = vshrl.u32 %v1588_v34, 16  ;;  %v2479_v13 = vld [vmem:[#allocation2 + $0x10] ss:$8 sps:$4 sm:$0xff]  }
  0x55   : > { %v2144_v5 = vcombine.low %v589_v12, %v603_v15  ;;  %v1363_v36 = vrot.slane %v2893_v7, 5  ;;  %v1620_v48 = vshll.u32 %v1588_v34, 16  ;;  %v2906_v17 = vsel %vm2773_vm13, %v2159_v43, %v837_v42  ;;  %v1590_v57 = vld [vmem:[#allocation2 + $0x20] sm:$0xf]  ;;  %v2921_v47 = vld [vmem:[#allocation2 + $0x14] sm:$0x1] }
  0x56   : > { %v2161_v4 = vrot.slane %v804_v40, 9  ;;  %v845_v59 = vrot.slane %v2747_v31, 5  ;;  %v2918_v16 = vsel %vm2773_vm13, %v2160_v45, %v841_v50  ;;  %v2162_v25 = vrot.slane %v805_v8, 9  ;;  %v2925_v56 = vld [vmem:[#allocation2 + $0x1c] sm:$0x1] }
  0x57   : > { %2308 = vmatmul.mubr.msk.bf16.gmra.mrb[4].mxu1 %vm618_vm10, %v2144_v5  ;;  %v1364_v58 = vsel %vm2773_vm13, %v2199_v44, %v1363_v36  ;;  %v849_v1 = vrot.slane %v2752_v41, 5  ;;  %v2166_v11 = vcombine.low %v2885_v49, %v2897_v35  ;;  %v1605_v12 = vrot.slane %v1603_v53, 4  ;;  %v1594_v14 = vld [vmem:[#allocation2 + $0x30] sm:$0xf]  ;;  %v1596_v29 = vld [vmem:[#allocation2 + $0x38] sm:$0xf] }
  0x58   : > { %2313 = vmatprep.mubr.msk.bf16.mxu1 %vm618_vm10, %v2149_v30  ;;  %v2204_v31 = vcombine.low %v1360_v32, %v1364_v58  ;;  %v1608_v61 = vrot.slane %v1606_v54, 5  ;;  %v1619_v15 = vrot.slane %v1617_v37, 4  ;;  %v1622_v30 = vrot.slane %v1620_v48, 5  ;;  %v2943_v6 = vld [vmem:[#allocation2 + $0x30] sm:$0xe] }
  0x59   : > { %v1631_v22 = vshrl.u32 %v1590_v57, 16  ;;  %v1634_v51 = vshll.u32 %v1590_v57, 16  ;;  %v2167_v41 = vcombine.low %v2906_v17, %v2918_v16  ;;  %v2933_v5 = vsel %vm2773_vm13, %v2161_v4, %v845_v59  ;;  %v2480_v20 = vld [vmem:[#allocation2 + $0x20] ss:$8 sps:$4 sm:$0xff]   ;;  %v2952_v45 = vld [vmem:[#allocation2 + $0x2c] sm:$0x1] }
  0x5a   : > { %2358 = vmatmul.mubr.msk.bf16.gmra.mrb[4].mxu0 %vm618_vm10, %v2204_v31  ;;  %v1645_v39 = vshrl.u32 %v1592_v10, 16  ;;  %v1648_v28 = vshll.u32 %v1592_v10, 16  ;;  %v2152_v19 = vcombine.low %v2829_v23, %v2835_v27  ;;  %v2941_v33 = vsel %vm2773_vm13, %v2162_v25, %v849_v1  ;;  %v2950_v23 = vld [vmem:[#allocation2 + $0x24] sm:$0x1]  ;;  %v2481_v53 = vld [vmem:[#allocation2 + $0x30] ss:$8 sps:$4 sm:$0xff]  }
  0x5b   : > { %v1659_v34 = vshrl.u32 %v1594_v14, 16  ;;  %v1662_v42 = vshll.u32 %v1594_v14, 16  ;;  %2363 = vmatprep.mubr.msk.bf16.mxu0 %vm618_vm10, %v2479_v13  ;;  %v1612_v43 = vshll.u32 %v2921_v47, 16  ;;  %v1626_v50 = vshll.u32 %v2925_v56, 16  ;;  %v2957_v48 = vld [vmem:[#allocation2 + $0x34] sm:$0x1] }
  0x5c   : > { %v1673_v27 = vshrl.u32 %v1596_v29, 16  ;;  %v1623_v44 = vor.u32 %v1622_v30, %v1619_v15  ;;  %v1633_v40 = vrot.slane %v1631_v22, 4  ;;  %v1676_v8 = vshll.u32 %v1596_v29, 16  ;;  %v1598_v58 = vld [vmem:[#allocation2 + $0x40] sm:$0xf] }
  0x5d   : > { %v2168_v54 = vcombine.low %v2933_v5, %v2941_v33  ;;  %v2163_v32 = vrot.slane %v2943_v6, 9  ;;  %v1647_v36 = vrot.slane %v1645_v39, 4  ;;  %v1650_v37 = vrot.slane %v1648_v28, 5  ;;  %v2985_v49 = vld [vmem:[#allocation2 + $0x44] sm:$0x1] }
  0x5e   : > { %v1661_v13 = vrot.slane %v1659_v34, 4  ;;  %v1664_v4 = vrot.slane %v1662_v42, 5  ;;  %v1675_v59 = vrot.slane %v1673_v27, 4  ;;  %v1678_v57 = vrot.slane %v1676_v8, 5  ;;  %v2482_v27 = vld [vmem:[#allocation2 + $0x40] ss:$8 sps:$4 sm:$0xff]  }
  0x5f   : > { %2314 = vmatmul.mubr.msk.bf16.vlgmr.msra.gmra.mrb[0].mxu1 %vm618_vm10, %v2150_v18  ;;  %v1636_v18 = vrot.slane %v1634_v51, 5  ;;  %v1614_v1 = vrot.slane %v1612_v43, 5  ;;  %v1628_v10 = vrot.slane %v1626_v50, 5  ;;  %v1640_v31 = vshll.u32 %v2950_v23, 16  ;;  %v2989_v50 = vld [vmem:[#allocation2 + $0x4c] sm:$0x1] }
  0x60   : > { %2322 = vmatpush3.bf16.msra.mxu1 %v2867_v60  ;;  %2317 = vmatprep.mubr.msk.bf16.mxu1 %vm618_vm10, %v2151_v55  ;;  %v1609_v60 = vor.u32 %v1608_v61, %v1605_v12  ;;  %v2962_v55 = vld [vmem:[%s3130_s3 + $0x20] sm:$0xf]  ;;  %v2965_v12 = vld [vmem:[#allocation2 + $0x3c] sm:$0x1]  ;;  %v807_v61 = vld [vmem:[#allocation2 + $0x38] sm:$0xe]  ;;  %v1651_v51 = vor.u32 %v1650_v37, %v1647_v36  ;;  %v1665_v34 = vor.u32 %v1664_v4, %v1661_v13 }
  0x61   : > { %2460 = vmatprep.subr.msk.bf16.mxu1 %vm631_vm0, %v2914_v0  ;;  %v1624_v14 = vrot.slane %v1623_v44, 4  ;;  %v1637_v15 = vor.u32 %v1636_v18, %v1633_v40  ;;  %v1654_v30 = vshll.u32 %v2952_v45, 16  ;;  %v1668_v22 = vshll.u32 %v2957_v48, 16 }
  0x62   : > { %v1610_v25 = vrot.slane %v1609_v60, 4  ;;  %2364 = vmatmul.mubr.msk.bf16.vlgmr.msra.gmra.mrb[0].mxu0 %vm618_vm10, %v2480_v20  ;;  %v1687_v29 = vshrl.u32 %v1598_v58, 16  ;;  %v1690_v39 = vshll.u32 %v1598_v58, 16  ;;  %v1704_v28 = vshll.u32 %v2859_v2, 16 }
  0x63   : > { %2372 = vmatpush3.bf16.msra.mxu0 %v2876_v21  ;;  %v853_v6 = vrot.slane %v2831_v38, 5  ;;  %v1679_v42 = vor.u32 %v1678_v57, %v1675_v59  ;;  %2367 = vmatprep.mubr.msk.bf16.mxu0 %vm618_vm10, %v2481_v53  ;;  %v2164_v20 = vrot.slane %v807_v61, 9  ;;  %v857_v60 = vrot.slane %v2837_v63, 5  ;;  %v1816_v61 = vld [vmem:[#allocation2 + $0x10] sm:$0xe] }
  0x64   : > { %v1615_v2 = vsel %vm2677_vm9, %v1610_v25, %v1614_v1  ;;  %2466 = vmatprep.subr.msk.bf16.mxu0 %vm631_vm0, %v2962_v55  ;;  %v1642_v21 = vrot.slane %v1640_v31, 5  ;;  %v1629_v38 = vsel %vm2677_vm9, %v1624_v14, %v1628_v10  ;;  %v1638_v35 = vrot.slane %v1637_v15, 4  ;;  %v1087_v1 = vld [vmem:[#allocation2 + $0x28] sm:$0xf]  ;;  %v1089_v10 = vld [vmem:[#allocation2 + $0x30] sm:$0xf] }
  0x65   : > { %v1670_v43 = vrot.slane %v1668_v22, 5  ;;  %v1652_v44 = vrot.slane %v1651_v51, 4  ;;  %v1689_v63 = vrot.slane %v1687_v29, 4  ;;  %v1692_v40 = vrot.slane %v1690_v39, 5  ;;  %v1817_v15 = vld [vmem:[#allocation2 + $0x18] sm:$0xe] }
  0x66   : > { %v1706_v18 = vrot.slane %v1704_v28, 5  ;;  %v1666_v8 = vrot.slane %v1665_v34, 4  ;;  %v1680_v53 = vrot.slane %v1679_v42, 4  ;;  %v1696_v37 = vshll.u32 %v2985_v49, 16 }
  0x67   : > { %2318 = vmatmul.mubr.msk.bf16.gmra.mrb[4].mxu1 %vm618_vm10, %v2152_v19  ;;  %v1682_v19 = vshll.u32 %v2965_v12, 16  ;;  %v1004_v13 = vsel %vm631_vm0, %v2914_v0, 0  ;;  %v854_v4 = vsel %vm2773_vm13, %v2163_v32, %v853_v6  ;;  %v858_v59 = vsel %vm2773_vm13, %v2164_v20, %v857_v60  ;;  %v2483_v20 = vld [vmem:[#allocation2 + $0x8] ss:$8 sps:$4 sm:$0xff]  }
  0x68   : > { %2323 = vmatprep.mubr.msk.bf16.mxu1 %vm618_vm10, %v2166_v11  ;;  %v1656_v11 = vrot.slane %v1654_v30, 5  ;;  %v2219_v57 = vcombine.low %v1615_v2, %v1629_v38  ;;  %v1643_v58 = vsel %vm2677_vm9, %v1638_v35, %v1642_v21  ;;  %v1710_v25 = vshll.u32 %v2989_v50, 16  ;;  %v1818_v2 = vld [vmem:[#allocation2 + $0x20] sm:$0xe] }
  0x69   : > { %v1684_v36 = vrot.slane %v1682_v19, 5  ;;  %v1693_v32 = vor.u32 %v1692_v40, %v1689_v63  ;;  %v1707_v31 = vor.u32 %v1706_v18, %v2889_v52  ;;  %v2169_v14 = vcombine.low %v854_v4, %v858_v59  ;;  %v2487_v52 = vld [vmem:[%s3130_s3 + $0x10] sm:$0xf]  ;;  %v1091_v18 = vld [vmem:[#allocation2 + $0x38] sm:$0xf] }
  0x6a   : > { %2368 = vmatmul.mubr.msk.bf16.gmra.mrb[4].mxu0 %vm618_vm10, %v2482_v27  ;;  %v1657_v0 = vsel %vm2677_vm9, %v1652_v44, %v1656_v11  ;;  %v1671_v17 = vsel %vm2677_vm9, %v1666_v8, %v1670_v43  ;;  %v1152_v5 = vshrl.u32 %v1087_v1, 16  ;;  %v1155_v33 = vshll.u32 %v1087_v1, 16  ;;  %v1819_v27 = vld [vmem:[#allocation2 + $0x28] sm:$0xe]  ;;  %v1820_v40 = vld [vmem:[#allocation2 + $0x30] sm:$0xe] }
  0x6b   : > { %v1685_v16 = vsel %vm2677_vm9, %v1680_v53, %v1684_v36  ;;  %2373 = vmatprep.mubr.msk.bf16.mxu0 %vm618_vm10, %v2219_v57  ;;  %v1169_v30 = vshll.u32 %v1089_v10, 16  ;;  %v2220_v22 = vcombine.low %v1643_v58, %v1657_v0  ;;  %v1712_v51 = vrot.slane %v1710_v25, 5  ;;  %v1093_v4 = vld [vmem:[#allocation2 + $0x40] sm:$0xf] }
  0x6c   : > { %v2227_v29 = vrot.slane %v1816_v61, 9  ;;  %v1842_v39 = vrot.slane %v2921_v47, 5  ;;  %v1694_v28 = vrot.slane %v1693_v32, 4  ;;  %v1708_v6 = vrot.slane %v1707_v31, 4  ;;  %v2484_v1 = vld [vmem:[#allocation2 + $0x18] ss:$8 sps:$4 sm:$0xff]  }
  0x6d   : > { %v2228_v34 = vrot.slane %v1817_v15, 9  ;;  %v1846_v42 = vrot.slane %v2925_v56, 5  ;;  %v1899_v19 = vsel %vm631_vm0, %v2962_v55, 0  ;;  %v2221_v60 = vcombine.low %v1671_v17, %v1685_v16  ;;  %v2485_v31 = vld [vmem:[#allocation2 + $0x28] ss:$8 sps:$4 sm:$0xff]  }
  0x6e   : > { %v1154_v21 = vrot.slane %v1152_v5, 4  ;;  %v1157_v38 = vrot.slane %v1155_v33, 5  ;;  %v1171_v11 = vrot.slane %v1169_v30, 5  ;;  %v1843_v43 = vsel %vm2773_vm13, %v2227_v29, %v1842_v39 }
  0x6f   : > { %2324 = vmatmul.mubr.msk.bf16.vlgmr.msra.gmra.mrb[0].mxu1 %vm618_vm10, %v2167_v41  ;;  %v1698_v41 = vrot.slane %v1696_v37, 5  ;;  %v1713_v56 = vsel %vm2677_vm9, %v1708_v6, %v1712_v51  ;;  %v1847_v55 = vsel %vm2773_vm13, %v2228_v34, %v1846_v42  ;;  %v2229_v44 = vrot.slane %v1818_v2, 9  ;;  %v2486_v34 = vld [vmem:[#allocation2 + $0x38] ss:$8 sps:$4 sm:$0xff]  }
  0x70   : > { %2332 = vmatpush3.bf16.msra.mxu1 %v1004_v13  ;;  %2327 = vmatprep.mubr.msk.bf16.mxu1 %vm618_vm10, %v2168_v54  ;;  %v1166_v54 = vshrl.u32 %v1089_v10, 16  ;;  %v1850_v63 = vrot.slane %v2950_v23, 5  ;;  %v1158_v8 = vor.u32 %v1157_v38, %v1154_v21  ;;  %v1161_v53 = vshll.u32 %v2813_v9, 16  ;;  %v1821_v13 = vld [vmem:[#allocation2 + $0x38] sm:$0xe] }
  0x71   : > { %2462 = vmatprep.subr.msk.bf16.mxu1 %vm631_vm0, %v2487_v52  ;;  %v1699_v47 = vsel %vm2677_vm9, %v1694_v28, %v1698_v41  ;;  %v1175_v37 = vshll.u32 %v2833_v26, 16  ;;  %v2236_v57 = vcombine.low %v1843_v43, %v1847_v55  ;;  %v2230_v58 = vrot.slane %v1819_v27, 9 }
  0x72   : > { %v1168_v35 = vrot.slane %v1166_v54, 4  ;;  %2374 = vmatmul.mubr.msk.bf16.vlgmr.msra.gmra.mrb[0].mxu0 %vm618_vm10, %v2220_v22  ;;  %v2222_v59 = vcombine.low %v1699_v47, %v1713_v56  ;;  %v1854_v25 = vrot.slane %v2952_v45, 5  ;;  %v2231_v10 = vrot.slane %v1820_v40, 9  ;;  %v1822_v22 = vld [vmem:[#allocation2 + $0x40] sm:$0xe] }
  0x73   : > { %2382 = vmatpush3.bf16.msra.mxu0 %v1899_v19  ;;  %2377 = vmatprep.mubr.msk.bf16.mxu0 %vm618_vm10, %v2221_v60  ;;  %v1858_v23 = vrot.slane %v2957_v48, 5  ;;  %v1180_v0 = vshrl.u32 %v1091_v18, 16  ;;  %v1183_v32 = vshll.u32 %v1091_v18, 16  ;;  %v2232_v61 = vrot.slane %v1821_v13, 9 }
  0x74   : > { %v1172_v36 = vor.u32 %v1171_v11, %v1168_v35  ;;  %v1862_v9 = vrot.slane %v2965_v12, 5  ;;  %v1197_v17 = vshll.u32 %v1093_v4, 16  ;;  %v1159_v26 = vrot.slane %v1158_v8, 4 }
  0x75   : > { %v1163_v16 = vrot.slane %v1161_v53, 5  ;;  %v1177_v15 = vrot.slane %v1175_v37, 5  ;;  %v1851_v45 = vsel %vm2773_vm13, %v2229_v44, %v1850_v63  ;;  %v1855_v48 = vsel %vm2773_vm13, %v2230_v58, %v1854_v25 }
  0x76   : > { %v1173_v41 = vrot.slane %v1172_v36, 4  ;;  %v1182_v52 = vrot.slane %v1180_v0, 4  ;;  %v1185_v5 = vrot.slane %v1183_v32, 5  ;;  %v1859_v12 = vsel %vm2773_vm13, %v2231_v10, %v1858_v23 }
  0x77   : > { %2328 = vmatmul.mubr.msk.bf16.gmra.mrb[4].mxu1 %vm618_vm10, %v2169_v14  ;;  %v1194_v14 = vshrl.u32 %v1093_v4, 16  ;;  %v1863_v33 = vsel %vm2773_vm13, %v2232_v61, %v1862_v9  ;;  %v1199_v30 = vrot.slane %v1197_v17, 5  ;;  %v1164_v51 = vsel %vm2677_vm9, %v1159_v26, %v1163_v16 }
  0x78   : > { %2333 = vmatprep.mubr.msk.bf16.mxu1 %vm618_vm10, %v2483_v20  ;;  %v1178_v29 = vsel %vm2677_vm9, %v1173_v41, %v1177_v15  ;;  %v1189_v39 = vshll.u32 %v2869_v62, 16  ;;  %v1203_v28 = vshll.u32 %v2893_v7, 16  ;;  %v2237_v6 = vcombine.low %v1851_v45, %v1855_v48 }
  0x79   : > { %v1196_v54 = vrot.slane %v1194_v14, 4  ;;  %v2238_v42 = vcombine.low %v1859_v12, %v1863_v33  ;;  %v1186_v19 = vor.u32 %v1185_v5, %v1182_v52  ;;  %v2233_v20 = vrot.slane %v1822_v22, 9 }
  0x7a   : > { %2378 = vmatmul.mubr.msk.bf16.gmra.mrb[4].mxu0 %vm618_vm10, %v2222_v59  ;;  %v1866_v60 = vrot.slane %v2985_v49, 5  ;;  %v2186_v2 = vcombine.low %v1164_v51, %v1178_v29  ;;  %v1870_v35 = vrot.slane %v2989_v50, 5  ;;  %v1191_v11 = vrot.slane %v1189_v39, 5 }
  0x7b   : > { %2383 = vmatprep.mubr.msk.bf16.mxu0 %vm618_vm10, %v2236_v57  ;;  %v1200_v21 = vor.u32 %v1199_v30, %v1196_v54  ;;  %v1205_v43 = vrot.slane %v1203_v28, 5  ;;  %v1187_v62 = vrot.slane %v1186_v19, 4 }
  0x7c   : > { %v1867_v49 = vsel %vm2773_vm13, %v2233_v20, %v1866_v60 }
  0x7d   : > { %v1201_v7 = vrot.slane %v1200_v21, 4  ;;  %v1192_v56 = vsel %vm2677_vm9, %v1187_v62, %v1191_v11 }
  0x7f   : > { %2334 = vmatmul.mubr.msk.bf16.vlgmr.msra.gmra.mrb[0].mxu1 %vm618_vm10, %v2484_v1  ;;  %v1206_v55 = vsel %vm2677_vm9, %v1201_v7, %v1205_v43 }
  0x80   : > { %2392 = vmatpush3.bf16.msra.mxu1 %v2545_v3  ;;  %2337 = vmatprep.mubr.msk.bf16.mxu1 %vm618_vm10, %v2485_v31  ;;  %v1823_v3 = vld [vmem:[#allocation2 + $0x48] sm:$0xe]  ;;  %v2187_v27 = vcombine.low %v1192_v56, %v1206_v55 }
  0x81   : > { %v2234_v38 = vrot.slane %v1823_v3, 9 }
  0x82   : > { %2384 = vmatmul.mubr.msk.bf16.vlgmr.msra.gmra.mrb[0].mxu0 %vm618_vm10, %v2237_v6 }
  0x83   : > { %2387 = vmatprep.mubr.msk.bf16.mxu0 %vm618_vm10, %v2238_v42  ;;  %v1871_v47 = vsel %vm2773_vm13, %v2234_v38, %v1870_v35 }
  0x84   : > { %v2239_v50 = vcombine.low %v1867_v49, %v1871_v47 }
  0x87   : > { %2338 = vmatmul.mubr.msk.bf16.gmra.mrb[4].mxu1 %vm618_vm10, %v2486_v34 }
  0x88   : > { %2347 = vmatprep.mubr.msk.bf16.mxu1 %vm618_vm10, %v2186_v2 }
  0x8a   : > { %2388 = vmatmul.mubr.msk.bf16.gmra.mrb[4].mxu0 %vm618_vm10, %v2239_v50 }
  0x93   : > { %2348 = vmatmul.mubr.msk.bf16.vlgmr.msra.gmra.mrb[4].mxu1 %vm618_vm10, %v2187_v27 }
 0x152   : > { %v2335_v44 = vpop.f32.mrb[0].mxu1 }
 0x153   : > { %v1040_v63 = vpop.f32.mrb[1].mxu1 }
 0x154   : > { %v2336_v40 = vpop.f32.mrb[2].mxu1 }
 0x155   : > { %v1043_v18 = vpop.f32.mrb[3].mxu1  ;;  %v2385_v46 = vpop.f32.mrb[0].mxu0 }
 0x156   : > { %v2393_v24 = vadd.f32 %v2385_v46, %v2335_v44  ;;  %v1935_v8 = vpop.f32.mrb[1].mxu0 }
 0x157   : > { %v2394_v53 = vadd.f32 %v1935_v8, %v1040_v63  ;;  %v2386_v36 = vpop.f32.mrb[2].mxu0 }
 0x158   : > { %1976 = vst.msk [vmem:[%s3084_s28 + $0x10] sm:$0xff] %vm618_vm10, %v2393_v24  ;;  %v2395_v37 = vadd.f32 %v2386_v36, %v2336_v40  ;;  %v1938_v13 = vpop.f32.mrb[3].mxu0  ;;  %v2006_v57 = vmul.f32 %v2393_v24, %v2393_v24  ;;  %v1985_v23 = vsel %vm618_vm10, %v2393_v24, 0.0 }
 0x159   : > { %1974 = vst.msk [vmem:[%s3084_s28] sm:$0xff] %vm618_vm10, %v2394_v53  ;;  %v2004_v4 = vmul.f32 %v2394_v53, %v2394_v53  ;;  %v2396_v59 = vadd.f32 %v1938_v13, %v1043_v18  ;;  %v1982_v58 = vsel %vm618_vm10, %v2394_v53, 0.0 }
 0x15a   : > { %1977 = vst.msk [vmem:[%s3084_s28 + $0x18] sm:$0xff] %vm618_vm10, %v2395_v37  ;;  %v2007_v32 = vmul.f32 %v2395_v37, %v2395_v37  ;;  %v2015_v26 = vsel %vm618_vm10, %v2006_v57, 0.0  ;;  %v1987_v16 = vsel %vm618_vm10, %v2395_v37, 0.0 }
 0x15b   : > { %1975 = vst.msk [vmem:[%s3084_s28 + $0x8] sm:$0xff] %vm618_vm10, %v2396_v59  ;;  %v1983_v25 = vsel %vm618_vm10, %v2396_v59, 0.0  ;;  %v2005_v1 = vmul.f32 %v2396_v59, %v2396_v59  ;;  %v2012_v0 = vsel %vm618_vm10, %v2004_v4, 0.0 }
 0x15c   : > { %v1984_v10 = vadd.f32 %v1983_v25, %v1982_v58  ;;  %v2017_v52 = vsel %vm618_vm10, %v2007_v32, 0.0 }
 0x15d   : > { %v2013_v31 = vsel %vm618_vm10, %v2005_v1, 0.0  ;;  %v2389_v61 = vpop.f32.mrb[4].mxu0 }
 0x15e   : > { %v1986_v9 = vadd.f32 %v1985_v23, %v1984_v10  ;;  %v2014_v14 = vadd.f32 %v2013_v31, %v2012_v0  ;;  %v1951_v17 = vpop.f32.mrb[5].mxu0 }
 0x15f   : > { %v2390_v41 = vpop.f32.mrb[6].mxu0 }
 0x160   : > { %v2016_v15 = vadd.f32 %v2015_v26, %v2014_v14  ;;  %v1988_v45 = vadd.f32 %v1987_v16, %v1986_v9  ;;  %v1954_v48 = vpop.f32.mrb[7].mxu0 }
 0x162   : > { %v2018_v54 = vadd.f32 %v2017_v52, %v2016_v15 }
 0x166   : > { %v2349_v5 = vpop.f32.mrb[4].mxu1 }
 0x167   : > { %v2397_v12 = vadd.f32 %v2389_v61, %v2349_v5  ;;  %v1286_v33 = vpop.f32.mrb[5].mxu1 }
 0x168   : > { %v2398_v30 = vadd.f32 %v1951_v17, %v1286_v33  ;;  %v2350_v22 = vpop.f32.mrb[6].mxu1 }
 0x169   : > { %1980 = vst.msk [vmem:[%s3084_s28 + $0x30] sm:$0xff] %vm618_vm10, %v2397_v12  ;;  %v2399_v51 = vadd.f32 %v2390_v41, %v2350_v22  ;;  %v1289_v29 = vpop.f32.mrb[7].mxu1  ;;  %v2010_v34 = vmul.f32 %v2397_v12, %v2397_v12  ;;  %v1993_v21 = vsel %vm618_vm10, %v2397_v12, 0.0 }
 0x16a   : > { %1978 = vst.msk [vmem:[%s3084_s28 + $0x20] sm:$0xff] %vm618_vm10, %v2398_v30  ;;  %v1989_v3 = vsel %vm618_vm10, %v2398_v30, 0.0  ;;  %v2008_v39 = vmul.f32 %v2398_v30, %v2398_v30  ;;  %v2400_v28 = vadd.f32 %v1954_v48, %v1289_v29 }
 0x16b   : > { %v1990_v6 = vadd.f32 %v1989_v3, %v1988_v45  ;;  %1981 = vst.msk [vmem:[%s3084_s28 + $0x38] sm:$0xff] %vm618_vm10, %v2399_v51  ;;  %v2011_v38 = vmul.f32 %v2399_v51, %v2399_v51  ;;  %v2023_v62 = vsel %vm618_vm10, %v2010_v34, 0.0  ;;  %v1995_v7 = vsel %vm618_vm10, %v2399_v51, 0.0 }
 0x16c   : > { %v2019_v42 = vsel %vm618_vm10, %v2008_v39, 0.0  ;;  %1979 = vst.msk [vmem:[%s3084_s28 + $0x28] sm:$0xff] %vm618_vm10, %v2400_v28  ;;  %v1991_v19 = vsel %vm618_vm10, %v2400_v28, 0.0  ;;  %v2009_v20 = vmul.f32 %v2400_v28, %v2400_v28 }
 0x16d   : > { %v2020_v60 = vadd.f32 %v2019_v42, %v2018_v54  ;;  %v1992_v2 = vadd.f32 %v1991_v19, %v1990_v6  ;;  %v2025_v50 = vsel %vm618_vm10, %v2011_v38, 0.0 }
 0x16e   : > { %v2021_v35 = vsel %vm618_vm10, %v2009_v20, 0.0 }
 0x16f   : > { %v1994_v11 = vadd.f32 %v1993_v21, %v1992_v2  ;;  %v2022_v43 = vadd.f32 %v2021_v35, %v2020_v60 }
 0x171   : > { %v1996_v49 = vadd.f32 %v1995_v7, %v1994_v11  ;;  %v2024_v47 = vadd.f32 %v2023_v62, %v2022_v43 }
 0x173   : > { %v1997_v56 = vrot.slane %v1996_v49, 4  ;;  %v2026_v55 = vadd.f32 %v2025_v50, %v2024_v47 }
 0x175   : > { %v1998_v27 = vadd.f32 %v1997_v56, %v1996_v49  ;;  %v2027_v44 = vrot.slane %v2026_v55, 4 }
 0x177   : > { %v1999_v63 = vrot.slane %v1998_v27, 2  ;;  %v2028_v40 = vadd.f32 %v2027_v44, %v2026_v55 }
 0x179   : > { %v2000_v18 = vadd.f32 %v1999_v63, %v1998_v27  ;;  %v2029_v46 = vrot.slane %v2028_v40, 2 }
 0x17b   : > { %v2001_v24 = vrot.slane %v2000_v18, 1  ;;  %v2030_v8 = vadd.f32 %v2029_v46, %v2028_v40 }
 0x17d   : > { %v2002_v53 = vadd.f32 %v2001_v24, %v2000_v18  ;;  %v2031_v36 = vrot.slane %v2030_v8, 1 }
 0x17f   : > { %2003 = vst.msk [vmem:[%s235_s6] sm:$0x1] %vm239_vm2, %v2002_v53  ;;  %v2032_v37 = vadd.f32 %v2031_v36, %v2030_v8 }
 0x181   : > { %2033 = vst.msk [vmem:[%s235_s6 + $0x1] sm:$0x1] %vm239_vm2, %v2032_v37 }
 0x182 PF: > { %s16_s18 = sadd.s32 1, %s2494_s18  }
 0x183   : > { %p13_p4 = scmp.ge.s32.totalorder %s16_s18, 4  }
 0x185   :  { %15 = sbr.rel (!%p13_p4) target bundleno = 1 (0x1), region = 88 }

</bundles_post_ra>
